<compile_context>
chip_gen: v7x
topology: tpu7x:2x2x1
jax: 0.10.0
libtpu: 0.0.40
codegen_flags: <defaults>
</compile_context>

<pallas_src>
import functools

import jax
import jax.numpy as jnp
from jax.experimental import pallas as pl
from jax.experimental.pallas import tpu as pltpu


def recombination_kernel(x_ref, params_ref, w_exp_ref, w_norm_ref, w_dila_ref,
                         w_se1_ref, w_zs_ref, o_ref, stack_ref, *, H, W, eps):
    C_in = x_ref.shape[0]
    C_e = w_exp_ref.shape[0]
    C_out = w_zs_ref.shape[0]
    P = x_ref.shape[-1]
    K = 9 * C_e                      # im2col contraction depth (9 taps x C_e channels)

    x_in = x_ref[...].astype(jnp.float32)                     # (C_in, P), in-kernel upcast

    # packed per-channel parameters: one tiny block, sliced into (C, 1) columns
    prm = params_ref[...]                                     # (C_e, 4)
    gamma = prm[:, 0:1]
    beta = prm[:, 1:2]
    b_se1 = prm[:, 2:3]
    b_zs = prm[:C_out, 3:4]                                   # b_zoom + b_skip

    # lane-position decode (h, w) for the spatial-conv masks;
    # strength-reduced to shift/and when H and W are powers of two.
    p_idx = jax.lax.broadcasted_iota(jnp.int32, (1, P), 1)
    if (H & (H - 1)) == 0 and (W & (W - 1)) == 0:
        hw = p_idx & (H * W - 1)
        h_idx = hw >> (W.bit_length() - 1)
        w_idx = hw & (W - 1)
    else:
        hw = p_idx % (H * W)
        h_idx = hw // W
        w_idx = hw % W

    # im2col stack tail: one ones-row (bias fold) + zero rows padding to a sublane multiple.
    # Written once; reused by both 3x3 convs.
    stack_ref[pl.ds(K, 8), :] = (
        jax.lax.broadcasted_iota(jnp.int32, (8, P), 0) == 0).astype(jnp.float32)

    def conv3x3_im2col(x, w_ref, dilation):
        """'Same'-padded (optionally dilated) 3x3 conv as ONE im2col matmul.

        x      : (C_e, P) f32
        w_ref  : Ref (C_out, 9*C_e + 8); column block t*C_e.. holds tap t = ky*3+kx,
                 column 9*C_e holds the bias (matched by the ones-row of the stack).
        """
        for ky in range(3):
            for kx in range(3):
                dy = dilation * (ky - 1)
                dx = dilation * (kx - 1)
                off = dy * W + dx
                # shifted[p] = x[p + off]  (XLU lane rotation, off the VPU critical path)
                shifted = x if off == 0 else pltpu.roll(x, shift=(-off) % P, axis=1)
                if dy == 0 and dx == 0:
                    masked = shifted
                else:
                    # zero-padding semantics; also prevents bleed across rows / batches.
                    valid = ((h_idx + dy >= 0) & (h_idx + dy < H) &
                             (w_idx + dx >= 0) & (w_idx + dx < W))     # (1, P)
                    masked = jnp.where(valid, shifted, 0.0)
                t = ky * 3 + kx
                stack_ref[pl.ds(t * C_e, C_e), :] = masked             # one store per tap
        # single MXU pass; conv bias folded via the ones-row / bias column
        return jnp.dot(w_ref[...], stack_ref[...], preferred_element_type=jnp.float32)

    # 1) expansion_conv (1x1 == channel matmul).  Its bias is intentionally NOT applied:
    #    train-mode batch-statistics BN subtracts the batch mean, which cancels it exactly.
    y = jnp.dot(w_exp_ref[...], x_in, preferred_element_type=jnp.float32)     # (C_e, P)

    # 2) BatchNorm2d (batch statistics over N*H*W) folded to per-channel scale/shift + ReLU6.
    inv_p = 1.0 / P
    mean = jnp.sum(y, axis=1, keepdims=True) * inv_p                          # (C_e, 1)
    var = jnp.sum(y * y, axis=1, keepdims=True) * inv_p - mean * mean
    scale = gamma * jax.lax.rsqrt(var + eps)
    shift = beta - mean * scale
    x = jnp.clip(y * scale + shift, 0.0, 6.0)                                 # ReLU6
    # TODO(synk): eval-mode BN (running stats) would become a host-side fold into scale/shift.

    # 3) norm_conv: 3x3, padding=1 -> one im2col matmul
    x = conv3x3_im2col(x, w_norm_ref, 1)                                      # (C_e, P)

    # 4) SegSEBlock: dilated 3x3 (rate=2, padding=2) -> 1x1 -> sigmoid gate
    d = conv3x3_im2col(x, w_dila_ref, 2)                                      # (C_h, P)
    se = jax.nn.sigmoid(
        jnp.dot(w_se1_ref[...], d, preferred_element_type=jnp.float32) + b_se1)
    x = x * se                                                                # (C_e, P)

    # 5) zoom_conv(x) + skip_conv(input) fused into ONE matmul:
    #    [w_zoom | w_skip] @ [x ; x_in]; the residual add happens inside the MXU accumulator.
    #    The concat is staged in the already-allocated stack scratch (aligned 8-row store +
    #    masked 4-row store), then read back as one (C_e + C_in, P) slab.
    stack_ref[pl.ds(0, C_e), :] = x
    stack_ref[pl.ds(C_e, C_in), :] = x_in
    xcat = stack_ref[pl.ds(0, C_e + C_in), :]
    out = jnp.dot(w_zs_ref[...], xcat, preferred_element_type=jnp.float32) + b_zs
    o_ref[...] = out.astype(o_ref.dtype)


def recombination_block(x_nchw, p, eps=1e-5):
    """x_nchw: (N, C_in, H, W).  p: dict of PyTorch-shaped parameters (see __main__)."""
    N, C_in, H, W = x_nchw.shape
    C_e = p["w_exp"].shape[0]          # expansion channels = 2 * out_channels
    C_h = p["w_dila"].shape[0]         # SegSE hidden channels = C_e // 2
    C_out = p["w_zoom"].shape[0]
    P = N * H * W
    K = 9 * C_e
    f32 = jnp.float32

    # channel-major flat layout: channels -> sublanes, N*H*W -> lanes (multiple of 128).
    # No host-side f32 cast: DMA the model dtype, upcast in-kernel.
    x_flat = jnp.transpose(x_nchw, (1, 0, 2, 3)).reshape(C_in, P)

    def col(v, rows):
        v = v.astype(f32).reshape(-1)
        return jnp.pad(v, (0, rows - v.shape[0]))[:, None]      # (rows, 1)

    # remaining per-channel vectors packed into one (C_e, 4) block
    # (b_exp cancels in train-mode BN; b_norm / b_dila are folded into the im2col weights)
    params = jnp.concatenate(
        [col(p["gamma"], C_e), col(p["beta"], C_e), col(p["b_se1"], C_e),
         col(p["b_zoom"] + p["b_skip"], C_e)], axis=1)

    def as_mat(w):   # (O, I, 1, 1) -> (O, I)
        return w.reshape(w.shape[0], w.shape[1]).astype(f32)

    def as_im2col(w, b):
        # (O, I, 3, 3) -> (O, 9*I) with column (ky*3+kx)*I + i = w[:, i, ky, kx],
        # then append [bias | 0...0] columns to match the (9*I + 8)-row stack
        # whose extra rows are [ones ; zeros].
        O, I, KH, KW = w.shape
        wm = jnp.transpose(w, (0, 2, 3, 1)).reshape(O, KH * KW * I).astype(f32)
        tail = jnp.concatenate([b.astype(f32)[:, None], jnp.zeros((O, 7), f32)], axis=1)
        return jnp.concatenate([wm, tail], axis=1)              # (O, 9*I + 8)

    w_exp = as_mat(p["w_exp"])
    w_se1 = as_mat(p["w_se1"])
    w_zs = jnp.concatenate([as_mat(p["w_zoom"]), as_mat(p["w_skip"])], axis=1)  # (C_out, C_e+C_in)
    w_norm = as_im2col(p["w_norm"], p["b_norm"])                # (C_e, K+8)
    w_dila = as_im2col(p["w_dila"], p["b_dila"])                # (C_h, K+8)

    kernel = functools.partial(recombination_kernel, H=H, W=W, eps=eps)

    out_flat = pl.pallas_call(
        kernel,
        out_shape=jax.ShapeDtypeStruct((C_out, P), x_nchw.dtype),
        grid_spec=pltpu.PrefetchScalarGridSpec(
            num_scalar_prefetch=0,
            grid=(1,),  # single step: whole problem fits VMEM, no per-step pipeline overhead
            in_specs=[
                pl.BlockSpec((C_in, P), lambda i: (0, 0)),           # x (flat, model dtype)
                pl.BlockSpec((C_e, 4), lambda i: (0, 0)),            # packed per-channel params
                pl.BlockSpec((C_e, C_in), lambda i: (0, 0)),         # expansion 1x1
                pl.BlockSpec((C_e, K + 8), lambda i: (0, 0)),        # norm_conv im2col weight
                pl.BlockSpec((C_h, K + 8), lambda i: (0, 0)),        # dila_conv im2col weight
                pl.BlockSpec((C_e, C_h), lambda i: (0, 0)),          # segse conv1 1x1
                pl.BlockSpec((C_out, C_e + C_in), lambda i: (0, 0)), # fused [zoom | skip] 1x1
            ],
            out_specs=pl.BlockSpec((C_out, P), lambda i: (0, 0)),
            scratch_shapes=[pltpu.VMEM((K + 8, P), jnp.float32)],    # shared im2col stack
        ),
        compiler_params=pltpu.CompilerParams(
            dimension_semantics=("arbitrary",),
        ),
    )(x_flat, params, w_exp, w_norm, w_dila, w_se1, w_zs)

    return jnp.transpose(out_flat.reshape(C_out, N, H, W), (1, 0, 2, 3))


def recombination_block_reference(x, p, eps=1e-5):
    """Pure-JAX reference mirroring the PyTorch module (train-mode BN)."""
    def conv(x, w, b, padding=0, dilation=1):
        out = jax.lax.conv_general_dilated(
            x, w, window_strides=(1, 1),
            padding=((padding, padding), (padding, padding)),
            rhs_dilation=(dilation, dilation),
            dimension_numbers=("NCHW", "OIHW", "NCHW"))
        return out + b[None, :, None, None]

    x1 = conv(x, p["w_exp"], p["b_exp"])
    mean = jnp.mean(x1, axis=(0, 2, 3), keepdims=True)
    var = jnp.mean(jnp.square(x1 - mean), axis=(0, 2, 3), keepdims=True)
    x1 = (p["gamma"][None, :, None, None] * (x1 - mean) / jnp.sqrt(var + eps)
          + p["beta"][None, :, None, None])
    x1 = jnp.clip(x1, 0.0, 6.0)
    x1 = conv(x1, p["w_norm"], p["b_norm"], padding=1)
    d = conv(x1, p["w_dila"], p["b_dila"], padding=2, dilation=2)
    se = jax.nn.sigmoid(conv(d, p["w_se1"], p["b_se1"]))
    x1 = x1 * se
    return conv(x1, p["w_zoom"], p["b_zoom"]) + conv(x, p["w_skip"], p["b_skip"])


if __name__ == "__main__":
    key = jax.random.PRNGKey(0)
    keys = jax.random.split(key, 16)

    # RecombinationBlock(in_channels=4, out_channels=4, net_mode='2d')
    N, C_in, C_out, H, W = 2, 4, 4, 16, 16
    C_e = 2 * C_out      # expan_channels (rate = 2)
    C_h = C_e // 2       # SegSE dila_conv output channels

    x = jax.random.normal(keys[0], (N, C_in, H, W), dtype=jnp.float32)

    p = {
        "w_exp":  0.3 * jax.random.normal(keys[1], (C_e, C_in, 1, 1), jnp.float32),
        "b_exp":  0.1 * jax.random.normal(keys[2], (C_e,), jnp.float32),
        "gamma":  1.0 + 0.1 * jax.random.normal(keys[3], (C_e,), jnp.float32),
        "beta":   0.1 * jax.random.normal(keys[4], (C_e,), jnp.float32),
        "w_norm": 0.1 * jax.random.normal(keys[5], (C_e, C_e, 3, 3), jnp.float32),
        "b_norm": 0.1 * jax.random.normal(keys[6], (C_e,), jnp.float32),
        "w_dila": 0.1 * jax.random.normal(keys[7], (C_h, C_e, 3, 3), jnp.float32),
        "b_dila": 0.1 * jax.random.normal(keys[8], (C_h,), jnp.float32),
        "w_se1":  0.3 * jax.random.normal(keys[9], (C_e, C_h, 1, 1), jnp.float32),
        "b_se1":  0.1 * jax.random.normal(keys[10], (C_e,), jnp.float32),
        "w_zoom": 0.3 * jax.random.normal(keys[11], (C_out, C_e, 1, 1), jnp.float32),
        "b_zoom": 0.1 * jax.random.normal(keys[12], (C_out,), jnp.float32),
        "w_skip": 0.3 * jax.random.normal(keys[13], (C_out, C_in, 1, 1), jnp.float32),
        "b_skip": 0.1 * jax.random.normal(keys[14], (C_out,), jnp.float32),
    }

    out = recombination_block(x, p)
    out = jax.block_until_ready(out)

    ref = recombination_block_reference(x, p)
    assert out.shape == (N, C_out, H, W)
    max_diff = float(jnp.max(jnp.abs(out - ref)))
    assert jnp.allclose(out, ref, atol=1e-3, rtol=1e-3), f"mismatch vs reference: {max_diff}"

    print("KERNEL_OK")
</pallas_src>

<mosaic_0001>
module attributes {stable_mosaic.version = 11 : i64} {
  func.func @recombination_kernel(%arg0: i32, %arg1: memref<4x512xf32, #tpu.memory_space<vmem>>, %arg2: memref<8x4xf32, #tpu.memory_space<vmem>>, %arg3: memref<8x4xf32, #tpu.memory_space<vmem>>, %arg4: memref<8x80xf32, #tpu.memory_space<vmem>>, %arg5: memref<4x80xf32, #tpu.memory_space<vmem>>, %arg6: memref<8x4xf32, #tpu.memory_space<vmem>>, %arg7: memref<4x12xf32, #tpu.memory_space<vmem>>, %arg8: memref<4x512xf32, #tpu.memory_space<vmem>>, %arg9: memref<80x512xf32, #tpu.memory_space<vmem>>) attributes {dimension_semantics = [#tpu.dimension_semantics<arbitrary>], iteration_bounds = array<i64: 1>, scalar_prefetch = 0 : i64, scratch_operands = 1 : i64, tpu.core_type = #tpu.core_type<tc>, window_params = [{pipeline_mode = #tpu.pipeline_mode<synchronous>, transform_indices = @transform_0, window_bounds = array<i64: 4, 512>}, {pipeline_mode = #tpu.pipeline_mode<synchronous>, transform_indices = @transform_1, window_bounds = array<i64: 8, 4>}, {pipeline_mode = #tpu.pipeline_mode<synchronous>, transform_indices = @transform_2, window_bounds = array<i64: 8, 4>}, {pipeline_mode = #tpu.pipeline_mode<synchronous>, transform_indices = @transform_3, window_bounds = array<i64: 8, 80>}, {pipeline_mode = #tpu.pipeline_mode<synchronous>, transform_indices = @transform_4, window_bounds = array<i64: 4, 80>}, {pipeline_mode = #tpu.pipeline_mode<synchronous>, transform_indices = @transform_5, window_bounds = array<i64: 8, 4>}, {pipeline_mode = #tpu.pipeline_mode<synchronous>, transform_indices = @transform_6, window_bounds = array<i64: 4, 12>}, {pipeline_mode = #tpu.pipeline_mode<synchronous>, transform_indices = @transform_7, window_bounds = array<i64: 4, 512>}]} {
    %c0 = arith.constant 0 : index
    %c0_0 = arith.constant 0 : index
    %0 = vector.load %arg1[%c0, %c0_0] : memref<4x512xf32, #tpu.memory_space<vmem>>, vector<4x512xf32>
    %c0_1 = arith.constant 0 : index
    %c0_2 = arith.constant 0 : index
    %1 = vector.load %arg2[%c0_1, %c0_2] : memref<8x4xf32, #tpu.memory_space<vmem>>, vector<8x4xf32>
    %2 = vector.extract_strided_slice %1 {offsets = [0, 0], sizes = [8, 1], strides = [1, 1]} : vector<8x4xf32> to vector<8x1xf32>
    %3 = vector.extract_strided_slice %1 {offsets = [0, 1], sizes = [8, 1], strides = [1, 1]} : vector<8x4xf32> to vector<8x1xf32>
    %4 = vector.extract_strided_slice %1 {offsets = [0, 2], sizes = [8, 1], strides = [1, 1]} : vector<8x4xf32> to vector<8x1xf32>
    %5 = vector.extract_strided_slice %1 {offsets = [0, 3], sizes = [4, 1], strides = [1, 1]} : vector<8x4xf32> to vector<4x1xf32>
    %6 = tpu.iota {dimensions = array<i32: 1>} : vector<1x512xi32>
    %c255_i32 = arith.constant 255 : i32
    %7 = vector.broadcast %c255_i32 : i32 to vector<1x512xi32>
    %8 = arith.andi %6, %7 : vector<1x512xi32>
    %c4_i32 = arith.constant 4 : i32
    %9 = vector.broadcast %c4_i32 : i32 to vector<1x512xi32>
    %10 = arith.shrsi %8, %9 : vector<1x512xi32>
    %c15_i32 = arith.constant 15 : i32
    %11 = vector.broadcast %c15_i32 : i32 to vector<1x512xi32>
    %12 = arith.andi %8, %11 : vector<1x512xi32>
    %13 = tpu.iota {dimensions = array<i32: 0>} : vector<8x512xi32>
    %c0_i32 = arith.constant 0 : i32
    %14 = vector.broadcast %c0_i32 : i32 to vector<8x512xi32>
    %15 = arith.cmpi eq, %13, %14 : vector<8x512xi32>
    %16 = arith.extui %15 : vector<8x512xi1> to vector<8x512xi32>
    %17 = arith.sitofp %16 : vector<8x512xi32> to vector<8x512xf32>
    %c72 = arith.constant 72 : index
    %c0_3 = arith.constant 0 : index
    %18 = vector.load %arg9[%c72, %c0_3] : memref<80x512xf32, #tpu.memory_space<vmem>>, vector<8x512xf32>
    tpu.vector_store %arg9[%c72, %c0_3], %17 {strides = array<i32>} : memref<80x512xf32, #tpu.memory_space<vmem>>, vector<8x512xf32>,
    %c0_4 = arith.constant 0 : index
    %c0_5 = arith.constant 0 : index
    %19 = vector.load %arg3[%c0_4, %c0_5] : memref<8x4xf32, #tpu.memory_space<vmem>>, vector<8x4xf32>
    %cst = arith.constant dense<0.000000e+00> : vector<8x512xf32>
    %20 = tpu.matmul %19, %0, %cst {dimension_numbers = #tpu.dot_dimension_numbers<[1], [0], [0], [1], [0, 0, 1, 1], [], []>} : vector<8x4xf32>, vector<4x512xf32>, vector<8x512xf32> -> vector<8x512xf32>
    %cst_6 = arith.constant dense<0.000000e+00> : vector<8xf32>
    %21 = vector.multi_reduction <add>, %20, %cst_6 [1] : vector<8x512xf32> to vector<8xf32>
    %22 = vector.shape_cast %21 : vector<8xf32> to vector<8x1xf32>
    %cst_7 = arith.constant 0.001953125 : f32
    %23 = vector.broadcast %cst_7 : f32 to vector<8x1xf32>
    %24 = arith.mulf %22, %23 : vector<8x1xf32>
    %25 = arith.mulf %20, %20 : vector<8x512xf32>
    %cst_8 = arith.constant dense<0.000000e+00> : vector<8xf32>
    %26 = vector.multi_reduction <add>, %25, %cst_8 [1] : vector<8x512xf32> to vector<8xf32>
    %27 = vector.shape_cast %26 : vector<8xf32> to vector<8x1xf32>
    %cst_9 = arith.constant 0.001953125 : f32
    %28 = vector.broadcast %cst_9 : f32 to vector<8x1xf32>
    %29 = arith.mulf %27, %28 : vector<8x1xf32>
    %30 = arith.mulf %24, %24 : vector<8x1xf32>
    %31 = arith.subf %29, %30 : vector<8x1xf32>
    %cst_10 = arith.constant 9.99999974E-6 : f32
    %32 = vector.broadcast %cst_10 : f32 to vector<8x1xf32>
    %33 = arith.addf %31, %32 : vector<8x1xf32>
    %34 = math.rsqrt %33 : vector<8x1xf32>
    %35 = arith.mulf %2, %34 : vector<8x1xf32>
    %36 = arith.mulf %24, %35 : vector<8x1xf32>
    %37 = arith.subf %3, %36 : vector<8x1xf32>
    %38 = vector.broadcast %35 : vector<8x1xf32> to vector<8x512xf32>
    %39 = arith.mulf %20, %38 : vector<8x512xf32>
    %40 = vector.broadcast %37 : vector<8x1xf32> to vector<8x512xf32>
    %41 = arith.addf %39, %40 : vector<8x512xf32>
    %cst_11 = arith.constant 0.000000e+00 : f32
    %cst_12 = arith.constant 6.000000e+00 : f32
    %42 = vector.broadcast %cst_11 : f32 to vector<8x512xf32>
    %43 = arith.maximumf %42, %41 : vector<8x512xf32>
    %44 = vector.broadcast %cst_12 : f32 to vector<8x512xf32>
    %45 = arith.minimumf %44, %43 : vector<8x512xf32>
    %c17_i32 = arith.constant 17 : i32
    %46 = tpu.dynamic_rotate %45 by %c17_i32 dim 1 : vector<8x512xf32>, i32 -> vector<8x512xf32>
    %c-1_i32 = arith.constant -1 : i32
    %47 = vector.broadcast %c-1_i32 : i32 to vector<1x512xi32>
    %48 = arith.addi %10, %47 : vector<1x512xi32>
    %c0_i32_13 = arith.constant 0 : i32
    %49 = vector.broadcast %c0_i32_13 : i32 to vector<1x512xi32>
    %50 = arith.cmpi sge, %48, %49 : vector<1x512xi32>
    %c-1_i32_14 = arith.constant -1 : i32
    %51 = vector.broadcast %c-1_i32_14 : i32 to vector<1x512xi32>
    %52 = arith.addi %10, %51 : vector<1x512xi32>
    %c16_i32 = arith.constant 16 : i32
    %53 = vector.broadcast %c16_i32 : i32 to vector<1x512xi32>
    %54 = arith.cmpi slt, %52, %53 : vector<1x512xi32>
    %55 = arith.andi %50, %54 : vector<1x512xi1>
    %c-1_i32_15 = arith.constant -1 : i32
    %56 = vector.broadcast %c-1_i32_15 : i32 to vector<1x512xi32>
    %57 = arith.addi %12, %56 : vector<1x512xi32>
    %c0_i32_16 = arith.constant 0 : i32
    %58 = vector.broadcast %c0_i32_16 : i32 to vector<1x512xi32>
    %59 = arith.cmpi sge, %57, %58 : vector<1x512xi32>
    %60 = arith.andi %55, %59 : vector<1x512xi1>
    %c-1_i32_17 = arith.constant -1 : i32
    %61 = vector.broadcast %c-1_i32_17 : i32 to vector<1x512xi32>
    %62 = arith.addi %12, %61 : vector<1x512xi32>
    %c16_i32_18 = arith.constant 16 : i32
    %63 = vector.broadcast %c16_i32_18 : i32 to vector<1x512xi32>
    %64 = arith.cmpi slt, %62, %63 : vector<1x512xi32>
    %65 = arith.andi %60, %64 : vector<1x512xi1>
    %cst_19 = arith.constant 0.000000e+00 : f32
    %66 = vector.shape_cast %65 : vector<1x512xi1> to vector<1x512xi1>
    %67 = vector.broadcast %66 : vector<1x512xi1> to vector<8x512xi1>
    %68 = vector.broadcast %cst_19 : f32 to vector<8x512xf32>
    %69 = arith.select %67, %46, %68 : vector<8x512xi1>, vector<8x512xf32>
    %c0_20 = arith.constant 0 : index
    %c0_21 = arith.constant 0 : index
    %70 = vector.load %arg9[%c0_20, %c0_21] : memref<80x512xf32, #tpu.memory_space<vmem>>, vector<8x512xf32>
    tpu.vector_store %arg9[%c0_20, %c0_21], %69 {strides = array<i32>} : memref<80x512xf32, #tpu.memory_space<vmem>>, vector<8x512xf32>,
    %c16_i32_22 = arith.constant 16 : i32
    %71 = tpu.dynamic_rotate %45 by %c16_i32_22 dim 1 : vector<8x512xf32>, i32 -> vector<8x512xf32>
    %c-1_i32_23 = arith.constant -1 : i32
    %72 = vector.broadcast %c-1_i32_23 : i32 to vector<1x512xi32>
    %73 = arith.addi %10, %72 : vector<1x512xi32>
    %c0_i32_24 = arith.constant 0 : i32
    %74 = vector.broadcast %c0_i32_24 : i32 to vector<1x512xi32>
    %75 = arith.cmpi sge, %73, %74 : vector<1x512xi32>
    %c-1_i32_25 = arith.constant -1 : i32
    %76 = vector.broadcast %c-1_i32_25 : i32 to vector<1x512xi32>
    %77 = arith.addi %10, %76 : vector<1x512xi32>
    %c16_i32_26 = arith.constant 16 : i32
    %78 = vector.broadcast %c16_i32_26 : i32 to vector<1x512xi32>
    %79 = arith.cmpi slt, %77, %78 : vector<1x512xi32>
    %80 = arith.andi %75, %79 : vector<1x512xi1>
    %c0_i32_27 = arith.constant 0 : i32
    %81 = vector.broadcast %c0_i32_27 : i32 to vector<1x512xi32>
    %82 = arith.addi %12, %81 : vector<1x512xi32>
    %c0_i32_28 = arith.constant 0 : i32
    %83 = vector.broadcast %c0_i32_28 : i32 to vector<1x512xi32>
    %84 = arith.cmpi sge, %82, %83 : vector<1x512xi32>
    %85 = arith.andi %80, %84 : vector<1x512xi1>
    %c0_i32_29 = arith.constant 0 : i32
    %86 = vector.broadcast %c0_i32_29 : i32 to vector<1x512xi32>
    %87 = arith.addi %12, %86 : vector<1x512xi32>
    %c16_i32_30 = arith.constant 16 : i32
    %88 = vector.broadcast %c16_i32_30 : i32 to vector<1x512xi32>
    %89 = arith.cmpi slt, %87, %88 : vector<1x512xi32>
    %90 = arith.andi %85, %89 : vector<1x512xi1>
    %cst_31 = arith.constant 0.000000e+00 : f32
    %91 = vector.shape_cast %90 : vector<1x512xi1> to vector<1x512xi1>
    %92 = vector.broadcast %91 : vector<1x512xi1> to vector<8x512xi1>
    %93 = vector.broadcast %cst_31 : f32 to vector<8x512xf32>
    %94 = arith.select %92, %71, %93 : vector<8x512xi1>, vector<8x512xf32>
    %c8 = arith.constant 8 : index
    %c0_32 = arith.constant 0 : index
    %95 = vector.load %arg9[%c8, %c0_32] : memref<80x512xf32, #tpu.memory_space<vmem>>, vector<8x512xf32>
    tpu.vector_store %arg9[%c8, %c0_32], %94 {strides = array<i32>} : memref<80x512xf32, #tpu.memory_space<vmem>>, vector<8x512xf32>,
    %c15_i32_33 = arith.constant 15 : i32
    %96 = tpu.dynamic_rotate %45 by %c15_i32_33 dim 1 : vector<8x512xf32>, i32 -> vector<8x512xf32>
    %c-1_i32_34 = arith.constant -1 : i32
    %97 = vector.broadcast %c-1_i32_34 : i32 to vector<1x512xi32>
    %98 = arith.addi %10, %97 : vector<1x512xi32>
    %c0_i32_35 = arith.constant 0 : i32
    %99 = vector.broadcast %c0_i32_35 : i32 to vector<1x512xi32>
    %100 = arith.cmpi sge, %98, %99 : vector<1x512xi32>
    %c-1_i32_36 = arith.constant -1 : i32
    %101 = vector.broadcast %c-1_i32_36 : i32 to vector<1x512xi32>
    %102 = arith.addi %10, %101 : vector<1x512xi32>
    %c16_i32_37 = arith.constant 16 : i32
    %103 = vector.broadcast %c16_i32_37 : i32 to vector<1x512xi32>
    %104 = arith.cmpi slt, %102, %103 : vector<1x512xi32>
    %105 = arith.andi %100, %104 : vector<1x512xi1>
    %c1_i32 = arith.constant 1 : i32
    %106 = vector.broadcast %c1_i32 : i32 to vector<1x512xi32>
    %107 = arith.addi %12, %106 : vector<1x512xi32>
    %c0_i32_38 = arith.constant 0 : i32
    %108 = vector.broadcast %c0_i32_38 : i32 to vector<1x512xi32>
    %109 = arith.cmpi sge, %107, %108 : vector<1x512xi32>
    %110 = arith.andi %105, %109 : vector<1x512xi1>
    %c1_i32_39 = arith.constant 1 : i32
    %111 = vector.broadcast %c1_i32_39 : i32 to vector<1x512xi32>
    %112 = arith.addi %12, %111 : vector<1x512xi32>
    %c16_i32_40 = arith.constant 16 : i32
    %113 = vector.broadcast %c16_i32_40 : i32 to vector<1x512xi32>
    %114 = arith.cmpi slt, %112, %113 : vector<1x512xi32>
    %115 = arith.andi %110, %114 : vector<1x512xi1>
    %cst_41 = arith.constant 0.000000e+00 : f32
    %116 = vector.shape_cast %115 : vector<1x512xi1> to vector<1x512xi1>
    %117 = vector.broadcast %116 : vector<1x512xi1> to vector<8x512xi1>
    %118 = vector.broadcast %cst_41 : f32 to vector<8x512xf32>
    %119 = arith.select %117, %96, %118 : vector<8x512xi1>, vector<8x512xf32>
    %c16 = arith.constant 16 : index
    %c0_42 = arith.constant 0 : index
    %120 = vector.load %arg9[%c16, %c0_42] : memref<80x512xf32, #tpu.memory_space<vmem>>, vector<8x512xf32>
    tpu.vector_store %arg9[%c16, %c0_42], %119 {strides = array<i32>} : memref<80x512xf32, #tpu.memory_space<vmem>>, vector<8x512xf32>,
    %c1_i32_43 = arith.constant 1 : i32
    %121 = tpu.dynamic_rotate %45 by %c1_i32_43 dim 1 : vector<8x512xf32>, i32 -> vector<8x512xf32>
    %c0_i32_44 = arith.constant 0 : i32
    %122 = vector.broadcast %c0_i32_44 : i32 to vector<1x512xi32>
    %123 = arith.addi %10, %122 : vector<1x512xi32>
    %c0_i32_45 = arith.constant 0 : i32
    %124 = vector.broadcast %c0_i32_45 : i32 to vector<1x512xi32>
    %125 = arith.cmpi sge, %123, %124 : vector<1x512xi32>
    %c0_i32_46 = arith.constant 0 : i32
    %126 = vector.broadcast %c0_i32_46 : i32 to vector<1x512xi32>
    %127 = arith.addi %10, %126 : vector<1x512xi32>
    %c16_i32_47 = arith.constant 16 : i32
    %128 = vector.broadcast %c16_i32_47 : i32 to vector<1x512xi32>
    %129 = arith.cmpi slt, %127, %128 : vector<1x512xi32>
    %130 = arith.andi %125, %129 : vector<1x512xi1>
    %c-1_i32_48 = arith.constant -1 : i32
    %131 = vector.broadcast %c-1_i32_48 : i32 to vector<1x512xi32>
    %132 = arith.addi %12, %131 : vector<1x512xi32>
    %c0_i32_49 = arith.constant 0 : i32
    %133 = vector.broadcast %c0_i32_49 : i32 to vector<1x512xi32>
    %134 = arith.cmpi sge, %132, %133 : vector<1x512xi32>
    %135 = arith.andi %130, %134 : vector<1x512xi1>
    %c-1_i32_50 = arith.constant -1 : i32
    %136 = vector.broadcast %c-1_i32_50 : i32 to vector<1x512xi32>
    %137 = arith.addi %12, %136 : vector<1x512xi32>
    %c16_i32_51 = arith.constant 16 : i32
    %138 = vector.broadcast %c16_i32_51 : i32 to vector<1x512xi32>
    %139 = arith.cmpi slt, %137, %138 : vector<1x512xi32>
    %140 = arith.andi %135, %139 : vector<1x512xi1>
    %cst_52 = arith.constant 0.000000e+00 : f32
    %141 = vector.shape_cast %140 : vector<1x512xi1> to vector<1x512xi1>
    %142 = vector.broadcast %141 : vector<1x512xi1> to vector<8x512xi1>
    %143 = vector.broadcast %cst_52 : f32 to vector<8x512xf32>
    %144 = arith.select %142, %121, %143 : vector<8x512xi1>, vector<8x512xf32>
    %c24 = arith.constant 24 : index
    %c0_53 = arith.constant 0 : index
    %145 = vector.load %arg9[%c24, %c0_53] : memref<80x512xf32, #tpu.memory_space<vmem>>, vector<8x512xf32>
    tpu.vector_store %arg9[%c24, %c0_53], %144 {strides = array<i32>} : memref<80x512xf32, #tpu.memory_space<vmem>>, vector<8x512xf32>,
    %c32 = arith.constant 32 : index
    %c0_54 = arith.constant 0 : index
    %146 = vector.load %arg9[%c32, %c0_54] : memref<80x512xf32, #tpu.memory_space<vmem>>, vector<8x512xf32>
    tpu.vector_store %arg9[%c32, %c0_54], %45 {strides = array<i32>} : memref<80x512xf32, #tpu.memory_space<vmem>>, vector<8x512xf32>,
    %c511_i32 = arith.constant 511 : i32
    %147 = tpu.dynamic_rotate %45 by %c511_i32 dim 1 : vector<8x512xf32>, i32 -> vector<8x512xf32>
    %c0_i32_55 = arith.constant 0 : i32
    %148 = vector.broadcast %c0_i32_55 : i32 to vector<1x512xi32>
    %149 = arith.addi %10, %148 : vector<1x512xi32>
    %c0_i32_56 = arith.constant 0 : i32
    %150 = vector.broadcast %c0_i32_56 : i32 to vector<1x512xi32>
    %151 = arith.cmpi sge, %149, %150 : vector<1x512xi32>
    %c0_i32_57 = arith.constant 0 : i32
    %152 = vector.broadcast %c0_i32_57 : i32 to vector<1x512xi32>
    %153 = arith.addi %10, %152 : vector<1x512xi32>
    %c16_i32_58 = arith.constant 16 : i32
    %154 = vector.broadcast %c16_i32_58 : i32 to vector<1x512xi32>
    %155 = arith.cmpi slt, %153, %154 : vector<1x512xi32>
    %156 = arith.andi %151, %155 : vector<1x512xi1>
    %c1_i32_59 = arith.constant 1 : i32
    %157 = vector.broadcast %c1_i32_59 : i32 to vector<1x512xi32>
    %158 = arith.addi %12, %157 : vector<1x512xi32>
    %c0_i32_60 = arith.constant 0 : i32
    %159 = vector.broadcast %c0_i32_60 : i32 to vector<1x512xi32>
    %160 = arith.cmpi sge, %158, %159 : vector<1x512xi32>
    %161 = arith.andi %156, %160 : vector<1x512xi1>
    %c1_i32_61 = arith.constant 1 : i32
    %162 = vector.broadcast %c1_i32_61 : i32 to vector<1x512xi32>
    %163 = arith.addi %12, %162 : vector<1x512xi32>
    %c16_i32_62 = arith.constant 16 : i32
    %164 = vector.broadcast %c16_i32_62 : i32 to vector<1x512xi32>
    %165 = arith.cmpi slt, %163, %164 : vector<1x512xi32>
    %166 = arith.andi %161, %165 : vector<1x512xi1>
    %cst_63 = arith.constant 0.000000e+00 : f32
    %167 = vector.shape_cast %166 : vector<1x512xi1> to vector<1x512xi1>
    %168 = vector.broadcast %167 : vector<1x512xi1> to vector<8x512xi1>
    %169 = vector.broadcast %cst_63 : f32 to vector<8x512xf32>
    %170 = arith.select %168, %147, %169 : vector<8x512xi1>, vector<8x512xf32>
    %c40 = arith.constant 40 : index
    %c0_64 = arith.constant 0 : index
    %171 = vector.load %arg9[%c40, %c0_64] : memref<80x512xf32, #tpu.memory_space<vmem>>, vector<8x512xf32>
    tpu.vector_store %arg9[%c40, %c0_64], %170 {strides = array<i32>} : memref<80x512xf32, #tpu.memory_space<vmem>>, vector<8x512xf32>,
    %c497_i32 = arith.constant 497 : i32
    %172 = tpu.dynamic_rotate %45 by %c497_i32 dim 1 : vector<8x512xf32>, i32 -> vector<8x512xf32>
    %c1_i32_65 = arith.constant 1 : i32
    %173 = vector.broadcast %c1_i32_65 : i32 to vector<1x512xi32>
    %174 = arith.addi %10, %173 : vector<1x512xi32>
    %c0_i32_66 = arith.constant 0 : i32
    %175 = vector.broadcast %c0_i32_66 : i32 to vector<1x512xi32>
    %176 = arith.cmpi sge, %174, %175 : vector<1x512xi32>
    %c1_i32_67 = arith.constant 1 : i32
    %177 = vector.broadcast %c1_i32_67 : i32 to vector<1x512xi32>
    %178 = arith.addi %10, %177 : vector<1x512xi32>
    %c16_i32_68 = arith.constant 16 : i32
    %179 = vector.broadcast %c16_i32_68 : i32 to vector<1x512xi32>
    %180 = arith.cmpi slt, %178, %179 : vector<1x512xi32>
    %181 = arith.andi %176, %180 : vector<1x512xi1>
    %c-1_i32_69 = arith.constant -1 : i32
    %182 = vector.broadcast %c-1_i32_69 : i32 to vector<1x512xi32>
    %183 = arith.addi %12, %182 : vector<1x512xi32>
    %c0_i32_70 = arith.constant 0 : i32
    %184 = vector.broadcast %c0_i32_70 : i32 to vector<1x512xi32>
    %185 = arith.cmpi sge, %183, %184 : vector<1x512xi32>
    %186 = arith.andi %181, %185 : vector<1x512xi1>
    %c-1_i32_71 = arith.constant -1 : i32
    %187 = vector.broadcast %c-1_i32_71 : i32 to vector<1x512xi32>
    %188 = arith.addi %12, %187 : vector<1x512xi32>
    %c16_i32_72 = arith.constant 16 : i32
    %189 = vector.broadcast %c16_i32_72 : i32 to vector<1x512xi32>
    %190 = arith.cmpi slt, %188, %189 : vector<1x512xi32>
    %191 = arith.andi %186, %190 : vector<1x512xi1>
    %cst_73 = arith.constant 0.000000e+00 : f32
    %192 = vector.shape_cast %191 : vector<1x512xi1> to vector<1x512xi1>
    %193 = vector.broadcast %192 : vector<1x512xi1> to vector<8x512xi1>
    %194 = vector.broadcast %cst_73 : f32 to vector<8x512xf32>
    %195 = arith.select %193, %172, %194 : vector<8x512xi1>, vector<8x512xf32>
    %c48 = arith.constant 48 : index
    %c0_74 = arith.constant 0 : index
    %196 = vector.load %arg9[%c48, %c0_74] : memref<80x512xf32, #tpu.memory_space<vmem>>, vector<8x512xf32>
    tpu.vector_store %arg9[%c48, %c0_74], %195 {strides = array<i32>} : memref<80x512xf32, #tpu.memory_space<vmem>>, vector<8x512xf32>,
    %c496_i32 = arith.constant 496 : i32
    %197 = tpu.dynamic_rotate %45 by %c496_i32 dim 1 : vector<8x512xf32>, i32 -> vector<8x512xf32>
    %c1_i32_75 = arith.constant 1 : i32
    %198 = vector.broadcast %c1_i32_75 : i32 to vector<1x512xi32>
    %199 = arith.addi %10, %198 : vector<1x512xi32>
    %c0_i32_76 = arith.constant 0 : i32
    %200 = vector.broadcast %c0_i32_76 : i32 to vector<1x512xi32>
    %201 = arith.cmpi sge, %199, %200 : vector<1x512xi32>
    %c1_i32_77 = arith.constant 1 : i32
    %202 = vector.broadcast %c1_i32_77 : i32 to vector<1x512xi32>
    %203 = arith.addi %10, %202 : vector<1x512xi32>
    %c16_i32_78 = arith.constant 16 : i32
    %204 = vector.broadcast %c16_i32_78 : i32 to vector<1x512xi32>
    %205 = arith.cmpi slt, %203, %204 : vector<1x512xi32>
    %206 = arith.andi %201, %205 : vector<1x512xi1>
    %c0_i32_79 = arith.constant 0 : i32
    %207 = vector.broadcast %c0_i32_79 : i32 to vector<1x512xi32>
    %208 = arith.addi %12, %207 : vector<1x512xi32>
    %c0_i32_80 = arith.constant 0 : i32
    %209 = vector.broadcast %c0_i32_80 : i32 to vector<1x512xi32>
    %210 = arith.cmpi sge, %208, %209 : vector<1x512xi32>
    %211 = arith.andi %206, %210 : vector<1x512xi1>
    %c0_i32_81 = arith.constant 0 : i32
    %212 = vector.broadcast %c0_i32_81 : i32 to vector<1x512xi32>
    %213 = arith.addi %12, %212 : vector<1x512xi32>
    %c16_i32_82 = arith.constant 16 : i32
    %214 = vector.broadcast %c16_i32_82 : i32 to vector<1x512xi32>
    %215 = arith.cmpi slt, %213, %214 : vector<1x512xi32>
    %216 = arith.andi %211, %215 : vector<1x512xi1>
    %cst_83 = arith.constant 0.000000e+00 : f32
    %217 = vector.shape_cast %216 : vector<1x512xi1> to vector<1x512xi1>
    %218 = vector.broadcast %217 : vector<1x512xi1> to vector<8x512xi1>
    %219 = vector.broadcast %cst_83 : f32 to vector<8x512xf32>
    %220 = arith.select %218, %197, %219 : vector<8x512xi1>, vector<8x512xf32>
    %c56 = arith.constant 56 : index
    %c0_84 = arith.constant 0 : index
    %221 = vector.load %arg9[%c56, %c0_84] : memref<80x512xf32, #tpu.memory_space<vmem>>, vector<8x512xf32>
    tpu.vector_store %arg9[%c56, %c0_84], %220 {strides = array<i32>} : memref<80x512xf32, #tpu.memory_space<vmem>>, vector<8x512xf32>,
    %c495_i32 = arith.constant 495 : i32
    %222 = tpu.dynamic_rotate %45 by %c495_i32 dim 1 : vector<8x512xf32>, i32 -> vector<8x512xf32>
    %c1_i32_85 = arith.constant 1 : i32
    %223 = vector.broadcast %c1_i32_85 : i32 to vector<1x512xi32>
    %224 = arith.addi %10, %223 : vector<1x512xi32>
    %c0_i32_86 = arith.constant 0 : i32
    %225 = vector.broadcast %c0_i32_86 : i32 to vector<1x512xi32>
    %226 = arith.cmpi sge, %224, %225 : vector<1x512xi32>
    %c1_i32_87 = arith.constant 1 : i32
    %227 = vector.broadcast %c1_i32_87 : i32 to vector<1x512xi32>
    %228 = arith.addi %10, %227 : vector<1x512xi32>
    %c16_i32_88 = arith.constant 16 : i32
    %229 = vector.broadcast %c16_i32_88 : i32 to vector<1x512xi32>
    %230 = arith.cmpi slt, %228, %229 : vector<1x512xi32>
    %231 = arith.andi %226, %230 : vector<1x512xi1>
    %c1_i32_89 = arith.constant 1 : i32
    %232 = vector.broadcast %c1_i32_89 : i32 to vector<1x512xi32>
    %233 = arith.addi %12, %232 : vector<1x512xi32>
    %c0_i32_90 = arith.constant 0 : i32
    %234 = vector.broadcast %c0_i32_90 : i32 to vector<1x512xi32>
    %235 = arith.cmpi sge, %233, %234 : vector<1x512xi32>
    %236 = arith.andi %231, %235 : vector<1x512xi1>
    %c1_i32_91 = arith.constant 1 : i32
    %237 = vector.broadcast %c1_i32_91 : i32 to vector<1x512xi32>
    %238 = arith.addi %12, %237 : vector<1x512xi32>
    %c16_i32_92 = arith.constant 16 : i32
    %239 = vector.broadcast %c16_i32_92 : i32 to vector<1x512xi32>
    %240 = arith.cmpi slt, %238, %239 : vector<1x512xi32>
    %241 = arith.andi %236, %240 : vector<1x512xi1>
    %cst_93 = arith.constant 0.000000e+00 : f32
    %242 = vector.shape_cast %241 : vector<1x512xi1> to vector<1x512xi1>
    %243 = vector.broadcast %242 : vector<1x512xi1> to vector<8x512xi1>
    %244 = vector.broadcast %cst_93 : f32 to vector<8x512xf32>
    %245 = arith.select %243, %222, %244 : vector<8x512xi1>, vector<8x512xf32>
    %c64 = arith.constant 64 : index
    %c0_94 = arith.constant 0 : index
    %246 = vector.load %arg9[%c64, %c0_94] : memref<80x512xf32, #tpu.memory_space<vmem>>, vector<8x512xf32>
    tpu.vector_store %arg9[%c64, %c0_94], %245 {strides = array<i32>} : memref<80x512xf32, #tpu.memory_space<vmem>>, vector<8x512xf32>,
    %c0_95 = arith.constant 0 : index
    %c0_96 = arith.constant 0 : index
    %247 = vector.load %arg4[%c0_95, %c0_96] : memref<8x80xf32, #tpu.memory_space<vmem>>, vector<8x80xf32>
    %c0_97 = arith.constant 0 : index
    %c0_98 = arith.constant 0 : index
    %248 = vector.load %arg9[%c0_97, %c0_98] : memref<80x512xf32, #tpu.memory_space<vmem>>, vector<80x512xf32>
    %cst_99 = arith.constant dense<0.000000e+00> : vector<8x512xf32>
    %249 = tpu.matmul %247, %248, %cst_99 {dimension_numbers = #tpu.dot_dimension_numbers<[1], [0], [0], [1], [0, 0, 1, 1], [], []>} : vector<8x80xf32>, vector<80x512xf32>, vector<8x512xf32> -> vector<8x512xf32>
    %c34_i32 = arith.constant 34 : i32
    %250 = tpu.dynamic_rotate %249 by %c34_i32 dim 1 : vector<8x512xf32>, i32 -> vector<8x512xf32>
    %c-2_i32 = arith.constant -2 : i32
    %251 = vector.broadcast %c-2_i32 : i32 to vector<1x512xi32>
    %252 = arith.addi %10, %251 : vector<1x512xi32>
    %c0_i32_100 = arith.constant 0 : i32
    %253 = vector.broadcast %c0_i32_100 : i32 to vector<1x512xi32>
    %254 = arith.cmpi sge, %252, %253 : vector<1x512xi32>
    %c-2_i32_101 = arith.constant -2 : i32
    %255 = vector.broadcast %c-2_i32_101 : i32 to vector<1x512xi32>
    %256 = arith.addi %10, %255 : vector<1x512xi32>
    %c16_i32_102 = arith.constant 16 : i32
    %257 = vector.broadcast %c16_i32_102 : i32 to vector<1x512xi32>
    %258 = arith.cmpi slt, %256, %257 : vector<1x512xi32>
    %259 = arith.andi %254, %258 : vector<1x512xi1>
    %c-2_i32_103 = arith.constant -2 : i32
    %260 = vector.broadcast %c-2_i32_103 : i32 to vector<1x512xi32>
    %261 = arith.addi %12, %260 : vector<1x512xi32>
    %c0_i32_104 = arith.constant 0 : i32
    %262 = vector.broadcast %c0_i32_104 : i32 to vector<1x512xi32>
    %263 = arith.cmpi sge, %261, %262 : vector<1x512xi32>
    %264 = arith.andi %259, %263 : vector<1x512xi1>
    %c-2_i32_105 = arith.constant -2 : i32
    %265 = vector.broadcast %c-2_i32_105 : i32 to vector<1x512xi32>
    %266 = arith.addi %12, %265 : vector<1x512xi32>
    %c16_i32_106 = arith.constant 16 : i32
    %267 = vector.broadcast %c16_i32_106 : i32 to vector<1x512xi32>
    %268 = arith.cmpi slt, %266, %267 : vector<1x512xi32>
    %269 = arith.andi %264, %268 : vector<1x512xi1>
    %cst_107 = arith.constant 0.000000e+00 : f32
    %270 = vector.shape_cast %269 : vector<1x512xi1> to vector<1x512xi1>
    %271 = vector.broadcast %270 : vector<1x512xi1> to vector<8x512xi1>
    %272 = vector.broadcast %cst_107 : f32 to vector<8x512xf32>
    %273 = arith.select %271, %250, %272 : vector<8x512xi1>, vector<8x512xf32>
    %c0_108 = arith.constant 0 : index
    %c0_109 = arith.constant 0 : index
    %274 = vector.load %arg9[%c0_108, %c0_109] : memref<80x512xf32, #tpu.memory_space<vmem>>, vector<8x512xf32>
    tpu.vector_store %arg9[%c0_108, %c0_109], %273 {strides = array<i32>} : memref<80x512xf32, #tpu.memory_space<vmem>>, vector<8x512xf32>,
    %c32_i32 = arith.constant 32 : i32
    %275 = tpu.dynamic_rotate %249 by %c32_i32 dim 1 : vector<8x512xf32>, i32 -> vector<8x512xf32>
    %c-2_i32_110 = arith.constant -2 : i32
    %276 = vector.broadcast %c-2_i32_110 : i32 to vector<1x512xi32>
    %277 = arith.addi %10, %276 : vector<1x512xi32>
    %c0_i32_111 = arith.constant 0 : i32
    %278 = vector.broadcast %c0_i32_111 : i32 to vector<1x512xi32>
    %279 = arith.cmpi sge, %277, %278 : vector<1x512xi32>
    %c-2_i32_112 = arith.constant -2 : i32
    %280 = vector.broadcast %c-2_i32_112 : i32 to vector<1x512xi32>
    %281 = arith.addi %10, %280 : vector<1x512xi32>
    %c16_i32_113 = arith.constant 16 : i32
    %282 = vector.broadcast %c16_i32_113 : i32 to vector<1x512xi32>
    %283 = arith.cmpi slt, %281, %282 : vector<1x512xi32>
    %284 = arith.andi %279, %283 : vector<1x512xi1>
    %c0_i32_114 = arith.constant 0 : i32
    %285 = vector.broadcast %c0_i32_114 : i32 to vector<1x512xi32>
    %286 = arith.addi %12, %285 : vector<1x512xi32>
    %c0_i32_115 = arith.constant 0 : i32
    %287 = vector.broadcast %c0_i32_115 : i32 to vector<1x512xi32>
    %288 = arith.cmpi sge, %286, %287 : vector<1x512xi32>
    %289 = arith.andi %284, %288 : vector<1x512xi1>
    %c0_i32_116 = arith.constant 0 : i32
    %290 = vector.broadcast %c0_i32_116 : i32 to vector<1x512xi32>
    %291 = arith.addi %12, %290 : vector<1x512xi32>
    %c16_i32_117 = arith.constant 16 : i32
    %292 = vector.broadcast %c16_i32_117 : i32 to vector<1x512xi32>
    %293 = arith.cmpi slt, %291, %292 : vector<1x512xi32>
    %294 = arith.andi %289, %293 : vector<1x512xi1>
    %cst_118 = arith.constant 0.000000e+00 : f32
    %295 = vector.shape_cast %294 : vector<1x512xi1> to vector<1x512xi1>
    %296 = vector.broadcast %295 : vector<1x512xi1> to vector<8x512xi1>
    %297 = vector.broadcast %cst_118 : f32 to vector<8x512xf32>
    %298 = arith.select %296, %275, %297 : vector<8x512xi1>, vector<8x512xf32>
    %c8_119 = arith.constant 8 : index
    %c0_120 = arith.constant 0 : index
    %299 = vector.load %arg9[%c8_119, %c0_120] : memref<80x512xf32, #tpu.memory_space<vmem>>, vector<8x512xf32>
    tpu.vector_store %arg9[%c8_119, %c0_120], %298 {strides = array<i32>} : memref<80x512xf32, #tpu.memory_space<vmem>>, vector<8x512xf32>,
    %c30_i32 = arith.constant 30 : i32
    %300 = tpu.dynamic_rotate %249 by %c30_i32 dim 1 : vector<8x512xf32>, i32 -> vector<8x512xf32>
    %c-2_i32_121 = arith.constant -2 : i32
    %301 = vector.broadcast %c-2_i32_121 : i32 to vector<1x512xi32>
    %302 = arith.addi %10, %301 : vector<1x512xi32>
    %c0_i32_122 = arith.constant 0 : i32
    %303 = vector.broadcast %c0_i32_122 : i32 to vector<1x512xi32>
    %304 = arith.cmpi sge, %302, %303 : vector<1x512xi32>
    %c-2_i32_123 = arith.constant -2 : i32
    %305 = vector.broadcast %c-2_i32_123 : i32 to vector<1x512xi32>
    %306 = arith.addi %10, %305 : vector<1x512xi32>
    %c16_i32_124 = arith.constant 16 : i32
    %307 = vector.broadcast %c16_i32_124 : i32 to vector<1x512xi32>
    %308 = arith.cmpi slt, %306, %307 : vector<1x512xi32>
    %309 = arith.andi %304, %308 : vector<1x512xi1>
    %c2_i32 = arith.constant 2 : i32
    %310 = vector.broadcast %c2_i32 : i32 to vector<1x512xi32>
    %311 = arith.addi %12, %310 : vector<1x512xi32>
    %c0_i32_125 = arith.constant 0 : i32
    %312 = vector.broadcast %c0_i32_125 : i32 to vector<1x512xi32>
    %313 = arith.cmpi sge, %311, %312 : vector<1x512xi32>
    %314 = arith.andi %309, %313 : vector<1x512xi1>
    %c2_i32_126 = arith.constant 2 : i32
    %315 = vector.broadcast %c2_i32_126 : i32 to vector<1x512xi32>
    %316 = arith.addi %12, %315 : vector<1x512xi32>
    %c16_i32_127 = arith.constant 16 : i32
    %317 = vector.broadcast %c16_i32_127 : i32 to vector<1x512xi32>
    %318 = arith.cmpi slt, %316, %317 : vector<1x512xi32>
    %319 = arith.andi %314, %318 : vector<1x512xi1>
    %cst_128 = arith.constant 0.000000e+00 : f32
    %320 = vector.shape_cast %319 : vector<1x512xi1> to vector<1x512xi1>
    %321 = vector.broadcast %320 : vector<1x512xi1> to vector<8x512xi1>
    %322 = vector.broadcast %cst_128 : f32 to vector<8x512xf32>
    %323 = arith.select %321, %300, %322 : vector<8x512xi1>, vector<8x512xf32>
    %c16_129 = arith.constant 16 : index
    %c0_130 = arith.constant 0 : index
    %324 = vector.load %arg9[%c16_129, %c0_130] : memref<80x512xf32, #tpu.memory_space<vmem>>, vector<8x512xf32>
    tpu.vector_store %arg9[%c16_129, %c0_130], %323 {strides = array<i32>} : memref<80x512xf32, #tpu.memory_space<vmem>>, vector<8x512xf32>,
    %c2_i32_131 = arith.constant 2 : i32
    %325 = tpu.dynamic_rotate %249 by %c2_i32_131 dim 1 : vector<8x512xf32>, i32 -> vector<8x512xf32>
    %c0_i32_132 = arith.constant 0 : i32
    %326 = vector.broadcast %c0_i32_132 : i32 to vector<1x512xi32>
    %327 = arith.addi %10, %326 : vector<1x512xi32>
    %c0_i32_133 = arith.constant 0 : i32
    %328 = vector.broadcast %c0_i32_133 : i32 to vector<1x512xi32>
    %329 = arith.cmpi sge, %327, %328 : vector<1x512xi32>
    %c0_i32_134 = arith.constant 0 : i32
    %330 = vector.broadcast %c0_i32_134 : i32 to vector<1x512xi32>
    %331 = arith.addi %10, %330 : vector<1x512xi32>
    %c16_i32_135 = arith.constant 16 : i32
    %332 = vector.broadcast %c16_i32_135 : i32 to vector<1x512xi32>
    %333 = arith.cmpi slt, %331, %332 : vector<1x512xi32>
    %334 = arith.andi %329, %333 : vector<1x512xi1>
    %c-2_i32_136 = arith.constant -2 : i32
    %335 = vector.broadcast %c-2_i32_136 : i32 to vector<1x512xi32>
    %336 = arith.addi %12, %335 : vector<1x512xi32>
    %c0_i32_137 = arith.constant 0 : i32
    %337 = vector.broadcast %c0_i32_137 : i32 to vector<1x512xi32>
    %338 = arith.cmpi sge, %336, %337 : vector<1x512xi32>
    %339 = arith.andi %334, %338 : vector<1x512xi1>
    %c-2_i32_138 = arith.constant -2 : i32
    %340 = vector.broadcast %c-2_i32_138 : i32 to vector<1x512xi32>
    %341 = arith.addi %12, %340 : vector<1x512xi32>
    %c16_i32_139 = arith.constant 16 : i32
    %342 = vector.broadcast %c16_i32_139 : i32 to vector<1x512xi32>
    %343 = arith.cmpi slt, %341, %342 : vector<1x512xi32>
    %344 = arith.andi %339, %343 : vector<1x512xi1>
    %cst_140 = arith.constant 0.000000e+00 : f32
    %345 = vector.shape_cast %344 : vector<1x512xi1> to vector<1x512xi1>
    %346 = vector.broadcast %345 : vector<1x512xi1> to vector<8x512xi1>
    %347 = vector.broadcast %cst_140 : f32 to vector<8x512xf32>
    %348 = arith.select %346, %325, %347 : vector<8x512xi1>, vector<8x512xf32>
    %c24_141 = arith.constant 24 : index
    %c0_142 = arith.constant 0 : index
    %349 = vector.load %arg9[%c24_141, %c0_142] : memref<80x512xf32, #tpu.memory_space<vmem>>, vector<8x512xf32>
    tpu.vector_store %arg9[%c24_141, %c0_142], %348 {strides = array<i32>} : memref<80x512xf32, #tpu.memory_space<vmem>>, vector<8x512xf32>,
    %c32_143 = arith.constant 32 : index
    %c0_144 = arith.constant 0 : index
    %350 = vector.load %arg9[%c32_143, %c0_144] : memref<80x512xf32, #tpu.memory_space<vmem>>, vector<8x512xf32>
    tpu.vector_store %arg9[%c32_143, %c0_144], %249 {strides = array<i32>} : memref<80x512xf32, #tpu.memory_space<vmem>>, vector<8x512xf32>,
    %c510_i32 = arith.constant 510 : i32
    %351 = tpu.dynamic_rotate %249 by %c510_i32 dim 1 : vector<8x512xf32>, i32 -> vector<8x512xf32>
    %c0_i32_145 = arith.constant 0 : i32
    %352 = vector.broadcast %c0_i32_145 : i32 to vector<1x512xi32>
    %353 = arith.addi %10, %352 : vector<1x512xi32>
    %c0_i32_146 = arith.constant 0 : i32
    %354 = vector.broadcast %c0_i32_146 : i32 to vector<1x512xi32>
    %355 = arith.cmpi sge, %353, %354 : vector<1x512xi32>
    %c0_i32_147 = arith.constant 0 : i32
    %356 = vector.broadcast %c0_i32_147 : i32 to vector<1x512xi32>
    %357 = arith.addi %10, %356 : vector<1x512xi32>
    %c16_i32_148 = arith.constant 16 : i32
    %358 = vector.broadcast %c16_i32_148 : i32 to vector<1x512xi32>
    %359 = arith.cmpi slt, %357, %358 : vector<1x512xi32>
    %360 = arith.andi %355, %359 : vector<1x512xi1>
    %c2_i32_149 = arith.constant 2 : i32
    %361 = vector.broadcast %c2_i32_149 : i32 to vector<1x512xi32>
    %362 = arith.addi %12, %361 : vector<1x512xi32>
    %c0_i32_150 = arith.constant 0 : i32
    %363 = vector.broadcast %c0_i32_150 : i32 to vector<1x512xi32>
    %364 = arith.cmpi sge, %362, %363 : vector<1x512xi32>
    %365 = arith.andi %360, %364 : vector<1x512xi1>
    %c2_i32_151 = arith.constant 2 : i32
    %366 = vector.broadcast %c2_i32_151 : i32 to vector<1x512xi32>
    %367 = arith.addi %12, %366 : vector<1x512xi32>
    %c16_i32_152 = arith.constant 16 : i32
    %368 = vector.broadcast %c16_i32_152 : i32 to vector<1x512xi32>
    %369 = arith.cmpi slt, %367, %368 : vector<1x512xi32>
    %370 = arith.andi %365, %369 : vector<1x512xi1>
    %cst_153 = arith.constant 0.000000e+00 : f32
    %371 = vector.shape_cast %370 : vector<1x512xi1> to vector<1x512xi1>
    %372 = vector.broadcast %371 : vector<1x512xi1> to vector<8x512xi1>
    %373 = vector.broadcast %cst_153 : f32 to vector<8x512xf32>
    %374 = arith.select %372, %351, %373 : vector<8x512xi1>, vector<8x512xf32>
    %c40_154 = arith.constant 40 : index
    %c0_155 = arith.constant 0 : index
    %375 = vector.load %arg9[%c40_154, %c0_155] : memref<80x512xf32, #tpu.memory_space<vmem>>, vector<8x512xf32>
    tpu.vector_store %arg9[%c40_154, %c0_155], %374 {strides = array<i32>} : memref<80x512xf32, #tpu.memory_space<vmem>>, vector<8x512xf32>,
    %c482_i32 = arith.constant 482 : i32
    %376 = tpu.dynamic_rotate %249 by %c482_i32 dim 1 : vector<8x512xf32>, i32 -> vector<8x512xf32>
    %c2_i32_156 = arith.constant 2 : i32
    %377 = vector.broadcast %c2_i32_156 : i32 to vector<1x512xi32>
    %378 = arith.addi %10, %377 : vector<1x512xi32>
    %c0_i32_157 = arith.constant 0 : i32
    %379 = vector.broadcast %c0_i32_157 : i32 to vector<1x512xi32>
    %380 = arith.cmpi sge, %378, %379 : vector<1x512xi32>
    %c2_i32_158 = arith.constant 2 : i32
    %381 = vector.broadcast %c2_i32_158 : i32 to vector<1x512xi32>
    %382 = arith.addi %10, %381 : vector<1x512xi32>
    %c16_i32_159 = arith.constant 16 : i32
    %383 = vector.broadcast %c16_i32_159 : i32 to vector<1x512xi32>
    %384 = arith.cmpi slt, %382, %383 : vector<1x512xi32>
    %385 = arith.andi %380, %384 : vector<1x512xi1>
    %c-2_i32_160 = arith.constant -2 : i32
    %386 = vector.broadcast %c-2_i32_160 : i32 to vector<1x512xi32>
    %387 = arith.addi %12, %386 : vector<1x512xi32>
    %c0_i32_161 = arith.constant 0 : i32
    %388 = vector.broadcast %c0_i32_161 : i32 to vector<1x512xi32>
    %389 = arith.cmpi sge, %387, %388 : vector<1x512xi32>
    %390 = arith.andi %385, %389 : vector<1x512xi1>
    %c-2_i32_162 = arith.constant -2 : i32
    %391 = vector.broadcast %c-2_i32_162 : i32 to vector<1x512xi32>
    %392 = arith.addi %12, %391 : vector<1x512xi32>
    %c16_i32_163 = arith.constant 16 : i32
    %393 = vector.broadcast %c16_i32_163 : i32 to vector<1x512xi32>
    %394 = arith.cmpi slt, %392, %393 : vector<1x512xi32>
    %395 = arith.andi %390, %394 : vector<1x512xi1>
    %cst_164 = arith.constant 0.000000e+00 : f32
    %396 = vector.shape_cast %395 : vector<1x512xi1> to vector<1x512xi1>
    %397 = vector.broadcast %396 : vector<1x512xi1> to vector<8x512xi1>
    %398 = vector.broadcast %cst_164 : f32 to vector<8x512xf32>
    %399 = arith.select %397, %376, %398 : vector<8x512xi1>, vector<8x512xf32>
    %c48_165 = arith.constant 48 : index
    %c0_166 = arith.constant 0 : index
    %400 = vector.load %arg9[%c48_165, %c0_166] : memref<80x512xf32, #tpu.memory_space<vmem>>, vector<8x512xf32>
    tpu.vector_store %arg9[%c48_165, %c0_166], %399 {strides = array<i32>} : memref<80x512xf32, #tpu.memory_space<vmem>>, vector<8x512xf32>,
    %c480_i32 = arith.constant 480 : i32
    %401 = tpu.dynamic_rotate %249 by %c480_i32 dim 1 : vector<8x512xf32>, i32 -> vector<8x512xf32>
    %c2_i32_167 = arith.constant 2 : i32
    %402 = vector.broadcast %c2_i32_167 : i32 to vector<1x512xi32>
    %403 = arith.addi %10, %402 : vector<1x512xi32>
    %c0_i32_168 = arith.constant 0 : i32
    %404 = vector.broadcast %c0_i32_168 : i32 to vector<1x512xi32>
    %405 = arith.cmpi sge, %403, %404 : vector<1x512xi32>
    %c2_i32_169 = arith.constant 2 : i32
    %406 = vector.broadcast %c2_i32_169 : i32 to vector<1x512xi32>
    %407 = arith.addi %10, %406 : vector<1x512xi32>
    %c16_i32_170 = arith.constant 16 : i32
    %408 = vector.broadcast %c16_i32_170 : i32 to vector<1x512xi32>
    %409 = arith.cmpi slt, %407, %408 : vector<1x512xi32>
    %410 = arith.andi %405, %409 : vector<1x512xi1>
    %c0_i32_171 = arith.constant 0 : i32
    %411 = vector.broadcast %c0_i32_171 : i32 to vector<1x512xi32>
    %412 = arith.addi %12, %411 : vector<1x512xi32>
    %c0_i32_172 = arith.constant 0 : i32
    %413 = vector.broadcast %c0_i32_172 : i32 to vector<1x512xi32>
    %414 = arith.cmpi sge, %412, %413 : vector<1x512xi32>
    %415 = arith.andi %410, %414 : vector<1x512xi1>
    %c0_i32_173 = arith.constant 0 : i32
    %416 = vector.broadcast %c0_i32_173 : i32 to vector<1x512xi32>
    %417 = arith.addi %12, %416 : vector<1x512xi32>
    %c16_i32_174 = arith.constant 16 : i32
    %418 = vector.broadcast %c16_i32_174 : i32 to vector<1x512xi32>
    %419 = arith.cmpi slt, %417, %418 : vector<1x512xi32>
    %420 = arith.andi %415, %419 : vector<1x512xi1>
    %cst_175 = arith.constant 0.000000e+00 : f32
    %421 = vector.shape_cast %420 : vector<1x512xi1> to vector<1x512xi1>
    %422 = vector.broadcast %421 : vector<1x512xi1> to vector<8x512xi1>
    %423 = vector.broadcast %cst_175 : f32 to vector<8x512xf32>
    %424 = arith.select %422, %401, %423 : vector<8x512xi1>, vector<8x512xf32>
    %c56_176 = arith.constant 56 : index
    %c0_177 = arith.constant 0 : index
    %425 = vector.load %arg9[%c56_176, %c0_177] : memref<80x512xf32, #tpu.memory_space<vmem>>, vector<8x512xf32>
    tpu.vector_store %arg9[%c56_176, %c0_177], %424 {strides = array<i32>} : memref<80x512xf32, #tpu.memory_space<vmem>>, vector<8x512xf32>,
    %c478_i32 = arith.constant 478 : i32
    %426 = tpu.dynamic_rotate %249 by %c478_i32 dim 1 : vector<8x512xf32>, i32 -> vector<8x512xf32>
    %c2_i32_178 = arith.constant 2 : i32
    %427 = vector.broadcast %c2_i32_178 : i32 to vector<1x512xi32>
    %428 = arith.addi %10, %427 : vector<1x512xi32>
    %c0_i32_179 = arith.constant 0 : i32
    %429 = vector.broadcast %c0_i32_179 : i32 to vector<1x512xi32>
    %430 = arith.cmpi sge, %428, %429 : vector<1x512xi32>
    %c2_i32_180 = arith.constant 2 : i32
    %431 = vector.broadcast %c2_i32_180 : i32 to vector<1x512xi32>
    %432 = arith.addi %10, %431 : vector<1x512xi32>
    %c16_i32_181 = arith.constant 16 : i32
    %433 = vector.broadcast %c16_i32_181 : i32 to vector<1x512xi32>
    %434 = arith.cmpi slt, %432, %433 : vector<1x512xi32>
    %435 = arith.andi %430, %434 : vector<1x512xi1>
    %c2_i32_182 = arith.constant 2 : i32
    %436 = vector.broadcast %c2_i32_182 : i32 to vector<1x512xi32>
    %437 = arith.addi %12, %436 : vector<1x512xi32>
    %c0_i32_183 = arith.constant 0 : i32
    %438 = vector.broadcast %c0_i32_183 : i32 to vector<1x512xi32>
    %439 = arith.cmpi sge, %437, %438 : vector<1x512xi32>
    %440 = arith.andi %435, %439 : vector<1x512xi1>
    %c2_i32_184 = arith.constant 2 : i32
    %441 = vector.broadcast %c2_i32_184 : i32 to vector<1x512xi32>
    %442 = arith.addi %12, %441 : vector<1x512xi32>
    %c16_i32_185 = arith.constant 16 : i32
    %443 = vector.broadcast %c16_i32_185 : i32 to vector<1x512xi32>
    %444 = arith.cmpi slt, %442, %443 : vector<1x512xi32>
    %445 = arith.andi %440, %444 : vector<1x512xi1>
    %cst_186 = arith.constant 0.000000e+00 : f32
    %446 = vector.shape_cast %445 : vector<1x512xi1> to vector<1x512xi1>
    %447 = vector.broadcast %446 : vector<1x512xi1> to vector<8x512xi1>
    %448 = vector.broadcast %cst_186 : f32 to vector<8x512xf32>
    %449 = arith.select %447, %426, %448 : vector<8x512xi1>, vector<8x512xf32>
    %c64_187 = arith.constant 64 : index
    %c0_188 = arith.constant 0 : index
    %450 = vector.load %arg9[%c64_187, %c0_188] : memref<80x512xf32, #tpu.memory_space<vmem>>, vector<8x512xf32>
    tpu.vector_store %arg9[%c64_187, %c0_188], %449 {strides = array<i32>} : memref<80x512xf32, #tpu.memory_space<vmem>>, vector<8x512xf32>,
    %c0_189 = arith.constant 0 : index
    %c0_190 = arith.constant 0 : index
    %451 = vector.load %arg5[%c0_189, %c0_190] : memref<4x80xf32, #tpu.memory_space<vmem>>, vector<4x80xf32>
    %c0_191 = arith.constant 0 : index
    %c0_192 = arith.constant 0 : index
    %452 = vector.load %arg9[%c0_191, %c0_192] : memref<80x512xf32, #tpu.memory_space<vmem>>, vector<80x512xf32>
    %cst_193 = arith.constant dense<0.000000e+00> : vector<4x512xf32>
    %453 = tpu.matmul %451, %452, %cst_193 {dimension_numbers = #tpu.dot_dimension_numbers<[1], [0], [0], [1], [0, 0, 1, 1], [], []>} : vector<4x80xf32>, vector<80x512xf32>, vector<4x512xf32> -> vector<4x512xf32>
    %c0_194 = arith.constant 0 : index
    %c0_195 = arith.constant 0 : index
    %454 = vector.load %arg6[%c0_194, %c0_195] : memref<8x4xf32, #tpu.memory_space<vmem>>, vector<8x4xf32>
    %cst_196 = arith.constant dense<0.000000e+00> : vector<8x512xf32>
    %455 = tpu.matmul %454, %453, %cst_196 {dimension_numbers = #tpu.dot_dimension_numbers<[1], [0], [0], [1], [0, 0, 1, 1], [], []>} : vector<8x4xf32>, vector<4x512xf32>, vector<8x512xf32> -> vector<8x512xf32>
    %456 = vector.broadcast %4 : vector<8x1xf32> to vector<8x512xf32>
    %457 = arith.addf %455, %456 : vector<8x512xf32>
    %458 = arith.negf %457 : vector<8x512xf32>
    %459 = math.exp %458 : vector<8x512xf32>
    %cst_197 = arith.constant 1.000000e+00 : f32
    %460 = vector.broadcast %cst_197 : f32 to vector<8x512xf32>
    %461 = arith.addf %460, %459 : vector<8x512xf32>
    %462 = arith.divf %460, %461 : vector<8x512xf32>
    %463 = arith.mulf %249, %462 : vector<8x512xf32>
    %c0_198 = arith.constant 0 : index
    %c0_199 = arith.constant 0 : index
    %464 = vector.load %arg9[%c0_198, %c0_199] : memref<80x512xf32, #tpu.memory_space<vmem>>, vector<8x512xf32>
    tpu.vector_store %arg9[%c0_198, %c0_199], %463 {strides = array<i32>} : memref<80x512xf32, #tpu.memory_space<vmem>>, vector<8x512xf32>,
    %c8_200 = arith.constant 8 : index
    %c0_201 = arith.constant 0 : index
    %465 = vector.load %arg9[%c8_200, %c0_201] : memref<80x512xf32, #tpu.memory_space<vmem>>, vector<4x512xf32>
    tpu.vector_store %arg9[%c8_200, %c0_201], %0 {strides = array<i32>} : memref<80x512xf32, #tpu.memory_space<vmem>>, vector<4x512xf32>,
    %c0_202 = arith.constant 0 : index
    %c0_203 = arith.constant 0 : index
    %466 = vector.load %arg9[%c0_202, %c0_203] : memref<80x512xf32, #tpu.memory_space<vmem>>, vector<12x512xf32>
    %c0_204 = arith.constant 0 : index
    %c0_205 = arith.constant 0 : index
    %467 = vector.load %arg7[%c0_204, %c0_205] : memref<4x12xf32, #tpu.memory_space<vmem>>, vector<4x12xf32>
    %cst_206 = arith.constant dense<0.000000e+00> : vector<4x512xf32>
    %468 = tpu.matmul %467, %466, %cst_206 {dimension_numbers = #tpu.dot_dimension_numbers<[1], [0], [0], [1], [0, 0, 1, 1], [], []>} : vector<4x12xf32>, vector<12x512xf32>, vector<4x512xf32> -> vector<4x512xf32>
    %469 = vector.broadcast %5 : vector<4x1xf32> to vector<4x512xf32>
    %470 = arith.addf %468, %469 : vector<4x512xf32>
    %c0_207 = arith.constant 0 : index
    %c0_208 = arith.constant 0 : index
    %471 = vector.load %arg8[%c0_207, %c0_208] : memref<4x512xf32, #tpu.memory_space<vmem>>, vector<4x512xf32>
    tpu.vector_store %arg8[%c0_207, %c0_208], %470 {strides = array<i32>} : memref<4x512xf32, #tpu.memory_space<vmem>>, vector<4x512xf32>,
    return
  }
  func.func @transform_0(%arg0: i32) -> (i32, i32) {
    %c0_i32 = arith.constant 0 : i32
    %c0_i32_0 = arith.constant 0 : i32
    %c0_i32_1 = arith.constant 0 : i32
    return %c0_i32, %c0_i32_0 : i32, i32
  }
  func.func @transform_1(%arg0: i32) -> (i32, i32) {
    %c0_i32 = arith.constant 0 : i32
    %c0_i32_0 = arith.constant 0 : i32
    %c0_i32_1 = arith.constant 0 : i32
    return %c0_i32, %c0_i32_0 : i32, i32
  }
  func.func @transform_2(%arg0: i32) -> (i32, i32) {
    %c0_i32 = arith.constant 0 : i32
    %c0_i32_0 = arith.constant 0 : i32
    %c0_i32_1 = arith.constant 0 : i32
    return %c0_i32, %c0_i32_0 : i32, i32
  }
  func.func @transform_3(%arg0: i32) -> (i32, i32) {
    %c0_i32 = arith.constant 0 : i32
    %c0_i32_0 = arith.constant 0 : i32
    %c0_i32_1 = arith.constant 0 : i32
    return %c0_i32, %c0_i32_0 : i32, i32
  }
  func.func @transform_4(%arg0: i32) -> (i32, i32) {
    %c0_i32 = arith.constant 0 : i32
    %c0_i32_0 = arith.constant 0 : i32
    %c0_i32_1 = arith.constant 0 : i32
    return %c0_i32, %c0_i32_0 : i32, i32
  }
  func.func @transform_5(%arg0: i32) -> (i32, i32) {
    %c0_i32 = arith.constant 0 : i32
    %c0_i32_0 = arith.constant 0 : i32
    %c0_i32_1 = arith.constant 0 : i32
    return %c0_i32, %c0_i32_0 : i32, i32
  }
  func.func @transform_6(%arg0: i32) -> (i32, i32) {
    %c0_i32 = arith.constant 0 : i32
    %c0_i32_0 = arith.constant 0 : i32
    %c0_i32_1 = arith.constant 0 : i32
    return %c0_i32, %c0_i32_0 : i32, i32
  }
  func.func @transform_7(%arg0: i32) -> (i32, i32) {
    %c0_i32 = arith.constant 0 : i32
    %c0_i32_0 = arith.constant 0 : i32
    %c0_i32_1 = arith.constant 0 : i32
    return %c0_i32, %c0_i32_0 : i32, i32
  }
}

</mosaic_0001>

<bundles_post_ra>
// kernel: tpu_custom_call.1
= control target key start
LH: loop header
LB: loop body
LE: loop exit
PB: predicated region body
PF: predicated region fallthrough
CT: control target
= control target key end

     0   :  { %vm3371_vm0 = vcmask 1043456   ;;  %v2082_v3 = vmov 0.0   ;;  %s3362_s0 = inlined_call_operand.vmem [shape: f32[4,512], index: 0, kind: input, shape index: {}]   ;;  %s3363_s1 = inlined_call_operand.vmem [shape: f32[8,4], index: 1, kind: input, shape index: {}]   ;;  %s3364_s2 = inlined_call_operand.vmem [shape: f32[8,4], index: 2, kind: input, shape index: {}]   ;;  %s3365_s3 = inlined_call_operand.vmem [shape: f32[8,80], index: 3, kind: input, shape index: {}]   ;;  %s3366_s4 = inlined_call_operand.vmem [shape: f32[4,80], index: 4, kind: input, shape index: {}]   ;;  %s3367_s5 = inlined_call_operand.vmem [shape: f32[8,4], index: 5, kind: input, shape index: {}]   ;;  %s3368_s6 = inlined_call_operand.vmem [shape: f32[4,12], index: 6, kind: input, shape index: {}]   ;;  %s3369_s7 = inlined_call_operand.hbm [shape: f32[4,512], index: 7, kind: output, shape index: {}]  }
   0x1   :  { %v2149_v0 = vld [vmem:[%s3362_s0] sm:$0xff]  ;;  %v2154_v1 = vld [vmem:[%s3362_s0 + $0x8] sm:$0xff]  ;;  %138 = vmatprep.mubr.f32.mxu0 %v2082_v3  ;;  %209 = vmatprep.mubr.f32.mxu1 %v2082_v3 }
   0x2   :  { %v2158_v2 = vcombine.high %v2149_v0, %v2149_v0  ;;  %v2163_v4 = vcombine.high %v2154_v1, %v2154_v1 }
   0x3   :  { %12 = vsyncpa [#allocation4], 0  ;;  %v56_v5 = vld [vmem:[%s3364_s2] sm:$0xff]  ;;  %vm3370_vm1 = vcmask 31744   ;;  %v2083_v20 = vmov 0   ;;  %v2084_v28 = vmov 1   ;;  %v30_v53 = vlaneseq }
   0x4   :  { %1771 = vmatprep.subr.msk.mxu0 %vm3371_vm0, %v2158_v2  ;;  %1774 = vmatprep.subr.msk.mxu1 %vm3371_vm0, %v2163_v4  ;;  %v29_v29 = vld [vmem:[%s3363_s1] sm:$0xff]  ;;  %s2085_s30 = smov 1   ;;  %s2086_s8 = smov 15  }
   0x5   :  { %1772 = vmatpush1.msk.msra.mxu0 %vm3371_vm0, %v2149_v0  ;;  %1775 = vmatpush1.msk.msra.mxu1 %vm3371_vm0, %v2154_v1  ;;  %s2087_s9 = smov 17   ;;  %s2088_s10 = smov 127   ;;  %v2228_v54 = vshrl.u32 %v30_v53, 7  ;;  %v2239_v56 = vand.u32 127, %v30_v53 }
   0x6   :  { %1773 = vmatmul.mubr.msk.f32.vlgmr.msra.gmra.mrb[0].mxu0 %vm3370_vm1, %v56_v5  ;;  %1776 = vmatmul.mubr.msk.f32.vlgmr.msra.gmra.mrb[0].mxu1 %vm3370_vm1, %v56_v5  ;;  %s2089_s11 = smov 16   ;;  %s2090_s12 = smov 113  }
   0x7   :  { %754 = vmatprep.mubr.f32.mxu0 %v2082_v3  ;;  %825 = vmatprep.mubr.f32.mxu1 %v2082_v3  ;;  %s2091_s13 = smov 112   ;;  %s2092_s14 = smov 111   ;;  %vm3372_vm2 = vcmp.eq.s32.totalorder %v2228_v54, 0  ;;  %v32_v57 = vadd.s32 128, %v2239_v56  ;;  %v34_v61 = vadd.s32 384, %v2239_v56  ;;  %v33_v62 = vadd.s32 256, %v2239_v56 }
   0x8   :  { %1912 = vset.pattern.permute.xlu1 %v2083_v20  ;;  %1913 = vset.pattern.permute.xlu0 %v2084_v28  ;;  %v1770_v55 = vsel %vm3372_vm2, 1.0, %v2082_v3  ;;  %vm277_vm7 = vcmp.lt.s32.totalorder %v2239_v56, 17  ;;  %vm342_vm12 = vcmp.lt.s32.totalorder %v2239_v56, 16  ;;  %s2095_s17 = smov 34   ;;  %s2097_s18 = smov 30  }
   0x9   :  { %55 = vst [vmem:[#allocation2 + $0x138] sm:$0xff] %v1770_v55  ;;  %v36_v58 = vand.u32 255, %v32_v57  ;;  %s2098_s19 = smov 2   ;;  %s2099_s20 = smov 126  }
   0xa   :  { %s2100_s21 = smov 98   ;;  %s2101_s22 = smov 96  }
   0xb   :  { %v2244_v60 = vshra.s32 %v36_v58, 4  ;;  %v2250_v5 = vand.u32 15, %v36_v58  ;;  %s2102_s23 = smov 94   ;;  %s2105_s29 = smov [#allocation3]  }
   0xc   :  { %s1762_s0 = sshll.u32 %s2105_s29, 4  ;;  %s1763_s0 = int_to_ptr.vmem [resolvable:$true] %s1762_s0 }
   0xd   :  { %p2063_p1 = scmp.lt.s32.totalorder %s1763_s0, %s1763_s0 }
  0xd9   :  { %v140_v6 = vpop.f32.mrb[0].mxu0  ;;  %v211_v7 = vpop.f32.mrb[0].mxu1 }
  0xda   :  { %v222_v8 = vmul.f32 %v140_v6, %v140_v6  ;;  %v142_v9 = vpop.f32.mrb[1].mxu0  ;;  %v213_v10 = vpop.f32.mrb[1].mxu1  ;;  %v224_v13 = vmul.f32 %v211_v7, %v211_v7 }
  0xdb   :  { %v216_v11 = vadd.f32 %v142_v9, %v140_v6  ;;  %v223_v12 = vmul.f32 %v142_v9, %v142_v9  ;;  %v225_v17 = vmul.f32 %v213_v10, %v213_v10 }
  0xdd   :  { %v217_v14 = vadd.f32 %v216_v11, %v211_v7  ;;  %v226_v15 = vadd.f32 %v223_v12, %v222_v8  ;;  %v37_v8 = vand.u32 255, %v33_v62  ;;  %v2257_v11 = vadd.s32 4294967295, %v2250_v5 }
  0xdf   :  { %v218_v16 = vadd.f32 %v217_v14, %v213_v10  ;;  %v227_v18 = vadd.f32 %v226_v15, %v224_v13  ;;  %v2261_v13 = vshra.s32 %v37_v8, 4  ;;  %vm3378_vm6 = vcmp.ge.s32.totalorder %v2257_v11, 0 }
  0xe0   :  { %vm3373_vm9 = vcmp.lt.s32.totalorder %v2257_v11, 16 }
  0xe1   :  { %219 = vadd.xlane.f32.xlu0 %v218_v16  ;;  %v228_v19 = vadd.f32 %v227_v18, %v225_v17  ;;  %v2272_v18 = vand.u32 15, %v37_v8  ;;  %v284_v20 = vadd.s32 4294967295, %v2261_v13  ;;  %v3441_v16 = vmov 0 }
  0xe3   :  { %vm288_vm14 = vcmp.ge.s32.totalorder %v284_v20, 0  ;;  %vm292_vm15 = vcmp.lt.s32.totalorder %v284_v20, 16 }
  0xe4   :  { %vm2316_vm0 = vmand %vm288_vm14, %vm292_vm15 }
  0xe5   :  { %229 = vadd.xlane.f32.xlu0 %v228_v19 }
 0x16e   :  { %v220_v21 = vpop.xlane.xlu0 %219 }
 0x16f   :  { %v221_v22 = vmul.f32 0.001953125, %v220_v21 }
 0x171   :  { %v232_v24 = vmul.f32 %v221_v22, %v221_v22 }
 0x172   :  { %v230_v23 = vpop.xlane.xlu0 %229 }
 0x173   :  { %v231_v25 = vmul.f32 0.001953125, %v230_v23 }
 0x175   :  { %v233_v26 = vsub.f32 %v231_v25, %v232_v24 }
 0x177   :  { %v234_v27 = vadd.f32 1e-05, %v233_v26  ;;  %v2291_v26 = vadd.s32 4294967295, %v2272_v18 }
 0x179   :  { %1918 = vrsqrt.f32 %v234_v27  ;;  %vm3375_vm2 = vcmp.ge.s32.totalorder %v2291_v26, 0  ;;  %v3451_v27 = vmov 0 }
 0x17a   :  { %vm308_vm15 = vmand %vm2316_vm0, %vm3375_vm2 }
 0x183   :  { %v1919_v30 = vpop.eup %1918 }
 0x184   :  { %v236_v31 = vmul.f32 %v1919_v30, %v29_v29 }
 0x186   :  { %v237_v32 = vmul.f32 %v236_v31, %v221_v22 }
 0x188   :  { %239 = vrot.lane.b32.xlu1 %v237_v32, %s2085_s30 }
 0x18c   :  { %245 = vperm.xlu1 %1912, %v236_v31   ;;  %v3453_v31 = vmov 0 }
 0x1fa   :  { %v240_v33 = vpop.permute.xlu1 %239 }
 0x1fb   :  { %v242_v34 = vsub.f32 %v29_v29, %v240_v33 }
 0x1fd   :  { %254 = vperm.xlu0 %1913, %v242_v34  }
 0x20b   :  { %v246_v35 = vpop.permute.xlu1 %245 }
 0x20c   :  { %v248_v36 = vmul.f32 %v246_v35, %v140_v6  ;;  %v249_v37 = vmul.f32 %v246_v35, %v142_v9  ;;  %v251_v38 = vmul.f32 %v246_v35, %v213_v10  ;;  %v250_v43 = vmul.f32 %v246_v35, %v211_v7 }
 0x20d   :  { %v283_v6 = vadd.s32 4294967295, %v2244_v60  ;;  %v38_v7 = vand.u32 255, %v34_v61  ;;  %v35_v10 = vand.u32 255, %v2239_v56 }
 0x20f   :  { %vm287_vm3 = vcmp.ge.s32.totalorder %v283_v6, 0  ;;  %vm291_vm4 = vcmp.lt.s32.totalorder %v283_v6, 16  ;;  %v2259_v12 = vshra.s32 %v38_v7, 4  ;;  %v2263_v14 = vshra.s32 %v35_v10, 4 }
 0x210   :  { %vm2265_vm5 = vmand %vm287_vm3, %vm291_vm4  ;;  %v2270_v17 = vand.u32 15, %v38_v7  ;;  %v2276_v21 = vand.u32 15, %v35_v10 }
 0x211   :  { %v285_v19 = vadd.s32 4294967295, %v2259_v12  ;;  %vm307_vm8 = vmand %vm2265_vm5, %vm3378_vm6  ;;  %v282_v23 = vadd.s32 4294967295, %v2263_v14  ;;  %v534_v62 = vadd.s32 1, %v2259_v12 }
 0x212   :  { %v2288_v25 = vadd.s32 4294967295, %v2270_v17  ;;  %vm2296_vm13 = vmand %vm307_vm8, %vm3373_vm9  ;;  %v2305_v29 = vadd.s32 4294967295, %v2276_v21  ;;  %v2386_v55 = vadd.s32 1, %v2270_v17 }
 0x213   :  { %vm289_vm10 = vcmp.ge.s32.totalorder %v285_v19, 0  ;;  %vm293_vm11 = vcmp.lt.s32.totalorder %v285_v19, 16  ;;  %vm286_vm3 = vcmp.ge.s32.totalorder %v282_v23, 0  ;;  %vm290_vm4 = vcmp.lt.s32.totalorder %v282_v23, 16 }
 0x214   :  { %vm2307_vm1 = vmand %vm289_vm10, %vm293_vm11  ;;  %vm3374_vm8 = vcmp.ge.s32.totalorder %v2288_v25, 0  ;;  %vm3379_vm10 = vcmp.ge.s32.totalorder %v2305_v29, 0  ;;  %vm3376_vm14 = vcmp.lt.s32.totalorder %v2288_v25, 16  ;;  %v3446_v23 = vmov 0 }
 0x215   :  { %vm2321_vm9 = vmand %vm286_vm3, %vm290_vm4  ;;  %vm3377_vm3 = vcmp.lt.s32.totalorder %v2291_v26, 16 }
 0x216   :  { %vm309_vm11 = vmand %vm2307_vm1, %vm3374_vm8 }
 0x217   :  { %vm1938_vm4 = vmpackc.low %vm2265_vm5, %vm2296_vm13  ;;  %vm446_vm13 = vcmp.lt.s32.totalorder %v2244_v60, 16 }
 0x218   :  { %vm2353_vm8 = vmand %vm2321_vm9, %vm3379_vm10  ;;  %vm442_vm10 = vcmp.ge.s32.totalorder %v2244_v60, 0 }
 0x219   :  { %vm2361_vm2 = vmand %vm309_vm11, %vm3376_vm14 }
 0x27c   :  { %v255_v39 = vpop.permute.xlu0 %254 }
 0x27d   :  { %v257_v40 = vadd.f32 %v255_v39, %v248_v36  ;;  %v258_v41 = vadd.f32 %v255_v39, %v249_v37  ;;  %v260_v42 = vadd.f32 %v255_v39, %v251_v38  ;;  %v259_v46 = vadd.f32 %v255_v39, %v250_v43 }
 0x27e   :  { %v2327_v36 = vadd.s32 1, %v2276_v21  ;;  %v2335_v38 = vadd.s32 1, %v2250_v5  ;;  %v2338_v39 = vadd.s32 1, %v2272_v18 }
 0x27f   :  { %v261_v44 = vmax.f32 %v257_v40, 0.0  ;;  %v264_v45 = vmax.f32 %v260_v42, 0.0  ;;  %v262_v47 = vmax.f32 %v258_v41, 0.0  ;;  %v263_v50 = vmax.f32 %v259_v46, 0.0 }
 0x280   :  { %vm3380_vm11 = vcmp.ge.s32.totalorder %v2335_v38, 0  ;;  %vm3381_vm14 = vcmp.ge.s32.totalorder %v2338_v39, 0  ;;  %vm3382_vm6 = vcmp.lt.s32.totalorder %v2335_v38, 16 }
 0x281   :  { %v2185_v48 = vmin.f32 %v261_v44, 6.0  ;;  %v2187_v49 = vmin.f32 %v264_v45, 6.0  ;;  %v2192_v51 = vmin.f32 %v262_v47, 6.0  ;;  %v2197_v52 = vmin.f32 %v263_v50, 6.0 }
 0x283   :  { %385 = vrot.lane.b32.xlu0 %v2187_v49, %s2086_s8  ;;  %269 = vrot.lane.b32.xlu1 %v2185_v48, %s2087_s9 }
 0x287   :  { %430 = vrot.lane.b32.xlu0 %v2192_v51, %s2085_s30  ;;  %271 = vrot.lane.b32.xlu1 %v2192_v51, %s2087_s9 }
 0x28b   :  { %434 = vrot.lane.b32.xlu0 %v2187_v49, %s2085_s30  ;;  %273 = vrot.lane.b32.xlu1 %v2197_v52, %s2087_s9 }
 0x28f   :  { %483 = vrot.lane.b32.xlu0 %v2192_v51, %s2088_s10  ;;  %275 = vrot.lane.b32.xlu1 %v2187_v49, %s2087_s9 }
 0x293   :  { %487 = vrot.lane.b32.xlu0 %v2187_v49, %s2088_s10  ;;  %334 = vrot.lane.b32.xlu1 %v2185_v48, %s2089_s11 }
 0x297   :  { %520 = vrot.lane.b32.xlu0 %v2192_v51, %s2090_s12  ;;  %336 = vrot.lane.b32.xlu1 %v2192_v51, %s2089_s11 }
 0x29b   :  { %524 = vrot.lane.b32.xlu0 %v2187_v49, %s2090_s12  ;;  %338 = vrot.lane.b32.xlu1 %v2197_v52, %s2089_s11 }
 0x29f   :  { %573 = vrot.lane.b32.xlu0 %v2192_v51, %s2091_s13  ;;  %340 = vrot.lane.b32.xlu1 %v2187_v49, %s2089_s11 }
 0x2a3   :  { %577 = vrot.lane.b32.xlu0 %v2187_v49, %s2091_s13  ;;  %379 = vrot.lane.b32.xlu1 %v2185_v48, %s2086_s8 }
 0x2a7   :  { %610 = vrot.lane.b32.xlu0 %v2192_v51, %s2092_s14  ;;  %381 = vrot.lane.b32.xlu1 %v2192_v51, %s2086_s8 }
 0x2ab   :  { %614 = vrot.lane.b32.xlu0 %v2187_v49, %s2092_s14  ;;  %383 = vrot.lane.b32.xlu1 %v2197_v52, %s2086_s8 }
 0x2af   :  { %428 = vrot.lane.b32.xlu1 %v2185_v48, %s2085_s30 }
 0x2b3   :  { %432 = vrot.lane.b32.xlu1 %v2197_v52, %s2085_s30 }
 0x2b7   :  { %481 = vrot.lane.b32.xlu1 %v2185_v48, %s2088_s10 }
 0x2bb   :  { %485 = vrot.lane.b32.xlu1 %v2197_v52, %s2088_s10 }
 0x2bf   :  { %518 = vrot.lane.b32.xlu1 %v2185_v48, %s2090_s12 }
 0x2c3   :  { %522 = vrot.lane.b32.xlu1 %v2197_v52, %s2090_s12 }
 0x2c7   :  { %571 = vrot.lane.b32.xlu1 %v2185_v48, %s2091_s13 }
 0x2cb   :  { %575 = vrot.lane.b32.xlu1 %v2197_v52, %s2091_s13 }
 0x2cf   :  { %608 = vrot.lane.b32.xlu1 %v2185_v48, %s2092_s14 }
 0x2d3   :  { %612 = vrot.lane.b32.xlu1 %v2197_v52, %s2092_s14 }
 0x2f5   :  { %v2242_v59 = vpop.permute.xlu1 %269  ;;  %v2278_v22 = vpop.permute.xlu0 %385 }
 0x2f9   :  { %v2248_v63 = vpop.permute.xlu1 %271  ;;  %v2314_v33 = vpop.permute.xlu0 %430 }
 0x2fa   :  { %v280_v28 = vsel %vm277_vm7, %v2242_v59, %v2248_v63 }
 0x2fd   :  { %v2253_v9 = vpop.permute.xlu1 %273  ;;  %v2372_v46 = vpop.permute.xlu0 %434 }
 0x2fe   :  { %v279_v50 = vsel %vm277_vm7, %v2248_v63, %v2253_v9 }
 0x301   :  { %v276_v15 = vpop.permute.xlu1 %275  ;;  %v2423_v7 = vpop.permute.xlu0 %483 }
 0x302   :  { %v278_v44 = vsel %vm277_vm7, %v2253_v9, %v276_v15  ;;  %v281_v45 = vsel %vm277_vm7, %v276_v15, %v2242_v59  ;;  %vm2399_vm7 = vmand %vm2265_vm5, %vm3380_vm11  ;;  %v3434_v9 = vmov 0 }
 0x303   :  { %vm1941_vm5 = vmpackc.low %vm2321_vm9, %vm2353_vm8  ;;  %vm3433_vm8 = vcmp.ge.s32.totalorder %v2263_v14, 0 }
 0x304   :  { %vm1944_vm11 = vmpackc.low %vm2307_vm1, %vm2361_vm2  ;;  %vm3436_vm2 = vcmp.lt.s32.totalorder %v2327_v36, 16 }
 0x305   :  { %v335_v24 = vpop.permute.xlu1 %334 }
 0x309   :  { %v337_v30 = vpop.permute.xlu1 %336 }
 0x30a   :  { %v345_v32 = vsel %vm342_vm12, %v335_v24, %v337_v30 }
 0x30b   :  { %v1939_v40 = vpack.c.bf16 %v345_v32, %v280_v28  ;;  %v488_v28 = vpop.permute.xlu0 %487 }
 0x30d   :  { %v339_v37 = vpop.permute.xlu1 %338  ;;  %1940 = vmatprep.subr.msk.bf16.mxu0 %vm1938_vm4, %v1939_v40  ;;  %vm2376_vm4 = vmand %vm308_vm15, %vm3377_vm3  ;;  %vm445_vm3 = vcmp.lt.s32.totalorder %v2263_v14, 16 }
 0x30e   :  { %v344_v42 = vsel %vm342_vm12, %v337_v30, %v339_v37  ;;  %vm2411_vm15 = vmand %vm2316_vm0, %vm3381_vm14 }
 0x30f   :  { %vm1947_vm14 = vmpackc.low %vm2316_vm0, %vm2376_vm4  ;;  %v1948_v8 = vpack.c.bf16 %v344_v42, %v279_v50  ;;  %vm443_vm4 = vcmp.ge.s32.totalorder %v2261_v13, 0 }
 0x310   :  { %vm2449_vm0 = vmand %vm2399_vm7, %vm3382_vm6  ;;  %vm447_vm7 = vcmp.lt.s32.totalorder %v2261_v13, 16 }
 0x311   :  { %v341_v53 = vpop.permute.xlu1 %340 }
 0x312   :  { %v343_v57 = vsel %vm342_vm12, %v339_v37, %v341_v53  ;;  %v346_v58 = vsel %vm342_vm12, %v341_v53, %v335_v24  ;;  %vm3383_vm12 = vcmp.ge.s32.totalorder %v2386_v55, 0 }
 0x313   :  { %v1942_v63 = vpack.c.bf16 %v346_v58, %v281_v45  ;;  %v1945_v6 = vpack.c.bf16 %v343_v57, %v278_v44  ;;  %v2544_v44 = vpop.permute.xlu0 %520 }
 0x315   :  { %v380_v59 = vpop.permute.xlu1 %379  ;;  %1943 = vmatpush1.bf16.msk.msra.mxu0 %vm1941_vm5, %v1942_v63  ;;  %1946 = vmatprep.subr.msk.bf16.mxu1 %vm1944_vm11, %v1945_v6  ;;  %vm2433_vm5 = vmand %vm3433_vm8, %vm445_vm3  ;;  %vm3388_vm3 = vcmp.lt.s32.totalorder %v2338_v39, 16  ;;  %vm444_vm8 = vcmp.ge.s32.totalorder %v2259_v12, 0 }
 0x316   :  { %1949 = vmatpush1.bf16.msk.msra.mxu1 %vm1947_vm14, %v1948_v8  ;;  %v3435_v9 = vsel %vm2433_vm5, 4294967295, %v3434_v9  ;;  %vm2441_vm11 = vmand %vm2321_vm9, %vm3436_vm2  ;;  %vm3448_vm2 = vcmp.ge.s32.totalorder %v2257_v11, 0 }
 0x317   :  { %vm2457_vm14 = vmand %vm442_vm10, %vm446_vm13  ;;  %vm3445_vm10 = vcmp.ge.s32.totalorder %v2305_v29, 0 }
 0x318   :  { %v3442_v16 = vsel %vm2457_vm14, 4294967295, %v3441_v16  ;;  %vm2465_vm9 = vmand %vm2307_vm1, %vm3383_vm12  ;;  %vm448_vm1 = vcmp.lt.s32.totalorder %v2259_v12, 16 }
 0x319   :  { %v382_v19 = vpop.permute.xlu1 %381  ;;  %vm2476_vm13 = vmand %vm2433_vm5, %vm3445_vm10  ;;  %vm387_vm5 = vcmp.lt.s32.totalorder %v2239_v56, 15 }
 0x31a   :  { %v3447_v23 = vsel %vm2476_vm13, 4294967295, %v3446_v23  ;;  %vm454_vm6 = vmand %vm2457_vm14, %vm3448_vm2  ;;  %vm3391_vm2 = vcmp.lt.s32.totalorder %v2386_v55, 16  ;;  %vm3455_vm14 = vcmp.lt.s32.totalorder %v2257_v11, 16  ;;  %v391_v34 = vsel %vm387_vm5, %v2278_v22, %v380_v59 }
 0x31b   :  { %vm2490_vm12 = vmand %vm2411_vm15, %vm3388_vm3  ;;  %v390_v35 = vsel %vm387_vm5, %v380_v59, %v382_v19 }
 0x31c   :  { %vm2494_vm10 = vmand %vm443_vm4, %vm447_vm7  ;;  %vm436_vm4 = vcmp.lt.s32.totalorder %v2239_v56, 1  ;;  %vm3458_vm7 = vcmp.ge.s32.totalorder %v2291_v26, 0 }
 0x31d   :  { %v3452_v27 = vsel %vm2494_vm10, 4294967295, %v3451_v27  ;;  %v384_v30 = vpop.permute.xlu1 %383  ;;  %vm2499_vm13 = vmand %vm444_vm8, %vm448_vm1  ;;  %vm3459_vm8 = vcmp.ge.s32.totalorder %v2288_v25, 0  ;;  %vm3462_vm1 = vcmp.lt.s32.totalorder %v2291_v26, 16 }
 0x31e   :  { %v3454_v31 = vsel %vm2499_vm13, 4294967295, %v3453_v31  ;;  %vm2506_vm15 = vmand %vm454_vm6, %vm3455_vm14  ;;  %v388_v47 = vsel %vm387_vm5, %v384_v30, %v2278_v22  ;;  %v389_v50 = vsel %vm387_vm5, %v382_v19, %v384_v30  ;;  %v532_v30 = vadd.s32 1, %v2244_v60 }
 0x31f   :  { %vm455_vm3 = vmand %vm2494_vm10, %vm3458_vm7 }
 0x320   :  { %vm456_vm6 = vmand %vm2499_vm13, %vm3459_vm8 }
 0x321   :  { %vm2528_vm14 = vmand %vm2465_vm9, %vm3391_vm2  ;;  %v429_v40 = vpop.permute.xlu1 %428  ;;  %vm3465_vm9 = vcmp.lt.s32.totalorder %v2288_v25, 16 }
 0x322   :  { %v439_v41 = vsel %vm436_vm4, %v429_v40, %v2314_v33  ;;  %v440_v42 = vsel %vm436_vm4, %v2372_v46, %v429_v40  ;;  %vm2540_vm7 = vmand %vm455_vm3, %vm3462_vm1  ;;  %vm3468_vm3 = vcmp.ge.s32.totalorder %v2386_v55, 0 }
 0x323   :  { %vm2548_vm8 = vmand %vm456_vm6, %vm3465_vm9  ;;  %v1951_v22 = vpack.c.bf16 %v439_v41, %v390_v35  ;;  %vm3472_vm6 = vcmp.ge.s32.totalorder %v2335_v38, 0 }
 0x324   :  { %vm497_vm1 = vmand %vm2499_vm13, %vm3468_vm3  ;;  %vm3471_vm3 = vnez %v3447_v23  ;;  %vm3473_vm13 = vnez %v3442_v16 }
 0x325   :  { %v433_v53 = vpop.permute.xlu1 %432  ;;  %vm1950_vm5 = vmpackc.low %vm2506_vm15, %vm2449_vm0  ;;  %vm3474_vm15 = vcmp.ge.s32.totalorder %v2338_v39, 0 }
 0x326   :  { %v437_v57 = vsel %vm436_vm4, %v433_v53, %v2372_v46  ;;  %v438_v58 = vsel %vm436_vm4, %v2314_v33, %v433_v53  ;;  %1952 = vmatprep.subr.msk.bf16.mxu0 %vm1950_vm5, %v1951_v22  ;;  %vm2574_vm9 = vmand %vm497_vm1, %vm3391_vm2  ;;  %v1954_v33 = vpack.c.bf16 %v440_v42, %v391_v34  ;;  %v2586_v46 = vpop.permute.xlu0 %524  ;;  %vm3475_vm5 = vcmp.lt.s32.totalorder %v2327_v36, 16 }
 0x327   :  { %vm1953_vm4 = vmpackc.low %vm3471_vm3, %vm2441_vm11  ;;  %vm3476_vm11 = vnez %v3435_v9  ;;  %v1957_v8 = vpack.c.bf16 %v437_v57, %v388_v47  ;;  %vm3481_vm2 = vcmp.lt.s32.totalorder %v2335_v38, 16  ;;  %v1960_v19 = vpack.c.bf16 %v438_v58, %v389_v50 }
 0x328   :  { %1955 = vmatpush1.bf16.msk.msra.mxu0 %vm1953_vm4, %v1954_v33  ;;  %vm495_vm0 = vmand %vm3473_vm13, %vm3472_vm6  ;;  %vm3479_vm6 = vcmp.lt.s32.totalorder %v2239_v56, 127  ;;  %v533_v34 = vadd.s32 1, %v2261_v13  ;;  %v2871_v53 = vadd.s32 4294967294, %v2276_v21  ;;  %v2880_v22 = vadd.s32 2, %v2250_v5 }
 0x329   :  { %v482_v61 = vpop.permute.xlu1 %481  ;;  %vm496_vm1 = vmand %vm2494_vm10, %vm3474_vm15 }
 0x32a   :  { %vm2597_vm3 = vmand %vm3476_vm11, %vm3475_vm5  ;;  %v493_v6 = vsel %vm3479_vm6, %v488_v28, %v482_v61  ;;  %v574_v37 = vpop.permute.xlu0 %573 }
 0x32b   :  { %vm1956_vm4 = vmpackc.low %vm2548_vm8, %vm2528_vm14  ;;  %vm3484_vm14 = vcmp.lt.s32.totalorder %v2338_v39, 16  ;;  %v1963_v35 = vpack.c.bf16 %v493_v6, %v2187_v49 }
 0x32c   :  { %1958 = vmatprep.subr.msk.bf16.mxu1 %vm1956_vm4, %v1957_v8  ;;  %vm3480_vm15 = vmmov %vm3479_vm6  ;;  %vm538_vm4 = vcmp.ge.s32.totalorder %v534_v62, 0 }
 0x32d   :  { %v492_v10 = vsel %vm3480_vm15, %v482_v61, %v2423_v7  ;;  %vm2612_vm5 = vmand %vm495_vm0, %vm3481_vm2  ;;  %v486_v23 = vpop.permute.xlu1 %485  ;;  %vm542_vm15 = vcmp.lt.s32.totalorder %v534_v62, 16  ;;  %vm3487_vm2 = vcmp.lt.s32.totalorder %v2239_v56, 127 }
 0x32e   :  { %vm1959_vm6 = vmpackc.low %vm2540_vm7, %vm2490_vm12  ;;  %v490_v32 = vsel %vm3487_vm2, %v486_v23, %v488_v28  ;;  %vm3392_vm12 = vmmov 1   ;;  %v1972_v42 = vpack.c.bf16 %v492_v10, %v2185_v48  ;;  %v578_v43 = vpop.permute.xlu0 %577  ;;  %v845_v48 = vadd.s32 4294967294, %v2263_v14 }
 0x32f   :  { %1961 = vmatpush1.bf16.msk.msra.mxu1 %vm1959_vm6, %v1960_v19  ;;  %vm2622_vm8 = vmand %vm496_vm1, %vm3484_vm14  ;;  %vm536_vm6 = vcmp.ge.s32.totalorder %v532_v30, 0  ;;  %vm540_vm14 = vcmp.lt.s32.totalorder %v532_v30, 16  ;;  %v1969_v49 = vpack.c.bf16 %v490_v32, %v2197_v52  ;;  %v848_v52 = vadd.s32 4294967294, %v2259_v12 }
 0x330   :  { %vm3488_vm0 = vmmov %vm3487_vm2  ;;  %vm537_vm2 = vcmp.ge.s32.totalorder %v533_v34, 0 }
 0x331   :  { %v491_v24 = vsel %vm3488_vm0, %v2423_v7, %v486_v23  ;;  %vm1962_vm7 = vmpackc.low %vm2574_vm9, %vm3392_vm12  ;;  %v519_v28 = vpop.permute.xlu1 %518  ;;  %v531_v7 = vadd.s32 1, %v2263_v14  ;;  %vm541_vm0 = vcmp.lt.s32.totalorder %v533_v34, 16 }
 0x332   :  { %1964 = vmatprep.subr.msk.bf16.mxu1 %vm1962_vm7, %v1963_v35  ;;  %vm2637_vm1 = vmand %vm538_vm4, %vm542_vm15  ;;  %v1966_v41 = vpack.c.bf16 %v491_v24, %v2192_v51  ;;  %vm3491_vm4 = vcmp.ge.s32.totalorder %v2288_v25, 0  ;;  %v611_v58 = vpop.permute.xlu0 %610 }
 0x333   :  { %vm1965_vm11 = vmpackc.low %vm2612_vm5, %vm3392_vm12  ;;  %vm3396_vm5 = vcmp.lt.s32.totalorder %v2239_v56, 113 }
 0x334   :  { %1967 = vmatprep.subr.msk.bf16.mxu0 %vm1965_vm11, %v1966_v41  ;;  %vm1968_vm9 = vmpackc.low %vm2622_vm8, %vm3392_vm12  ;;  %v530_v47 = vsel %vm3396_vm5, %v2586_v46, %v519_v28  ;;  %v846_v41 = vadd.s32 4294967294, %v2244_v60 }
 0x335   :  { %1970 = vmatpush1.bf16.msk.msra.mxu1 %vm1968_vm9, %v1969_v49  ;;  %vm550_vm15 = vmand %vm2637_vm1, %vm3491_vm4  ;;  %v523_v45 = vpop.permute.xlu1 %522  ;;  %vm535_vm9 = vcmp.ge.s32.totalorder %v531_v7, 0  ;;  %vm539_vm4 = vcmp.lt.s32.totalorder %v531_v7, 16  ;;  %v2844_v49 = vadd.s32 4294967294, %v2250_v5 }
 0x336   :  { %vm1971_vm7 = vmpackc.low %vm2597_vm3, %vm3392_vm12  ;;  %vm3496_vm3 = vcmp.lt.s32.totalorder %v2288_v25, 16  ;;  %v615_v6 = vpop.permute.xlu0 %614 }
 0x337   :  { %1973 = vmatpush1.bf16.msk.msra.mxu0 %vm1971_vm7, %v1972_v42  ;;  %vm2659_vm11 = vmand %vm536_vm6, %vm540_vm14  ;;  %vm3499_vm6 = vcmp.ge.s32.totalorder %v2257_v11, 0  ;;  %vm579_vm7 = vcmp.lt.s32.totalorder %v2239_v56, 112  ;;  %v847_v42 = vadd.s32 4294967294, %v2261_v13 }
 0x338   :  { %vm2665_vm8 = vmand %vm537_vm2, %vm541_vm0  ;;  %vm3500_vm2 = vcmp.ge.s32.totalorder %v2291_v26, 0 }
 0x339   :  { %vm2671_vm12 = vmand %vm550_vm15, %vm3496_vm3  ;;  %v572_v50 = vpop.permute.xlu1 %571  ;;  %vm3503_vm3 = vcmp.lt.s32.totalorder %v2257_v11, 16 }
 0x33a   :  { %vm548_vm14 = vmand %vm2659_vm11, %vm3499_vm6  ;;  %v583_v57 = vsel %vm579_vm7, %v578_v43, %v572_v50  ;;  %vm3506_vm6 = vcmp.lt.s32.totalorder %v2291_v26, 16  ;;  %v582_v59 = vsel %vm579_vm7, %v572_v50, %v574_v37  ;;  %v2868_v50 = vadd.s32 4294967294, %v2270_v17 }
 0x33b   :  { %vm549_vm0 = vmand %vm2665_vm8, %vm3500_vm2 }
 0x33c   :  { %vm2687_vm15 = vmand %vm535_vm9, %vm539_vm4  ;;  %vm3509_vm9 = vcmp.lt.s32.totalorder %v2239_v56, 113 }
 0x33d   :  { %vm2693_vm10 = vmand %vm548_vm14, %vm3503_vm3  ;;  %v527_v11 = vsel %vm3509_vm9, %v523_v45, %v2586_v46  ;;  %vm3511_vm14 = vcmp.ge.s32.totalorder %v2386_v55, 0  ;;  %v576_v61 = vpop.permute.xlu1 %575 }
 0x33e   :  { %vm2701_vm5 = vmand %vm549_vm0, %vm3506_vm6  ;;  %vm3512_vm0 = vcmp.ge.s32.totalorder %v2305_v29, 0  ;;  %v580_v62 = vsel %vm579_vm7, %v576_v61, %v578_v43  ;;  %v581_v63 = vsel %vm579_vm7, %v574_v37, %v576_v61  ;;  %v1975_v29 = vpack.c.bf16 %v583_v57, %v530_v47  ;;  %v645_v37 = vld [vmem:[%s3365_s3] sm:$0xff]  ;;  %s2096_s3 = smov 32  }
 0x33f   :  { %vm3510_vm4 = vmmov %vm3509_vm9  ;;  %vm3520_vm9 = vcmp.ge.s32.totalorder %v2338_v39, 0  ;;  %v2853_v43 = vadd.s32 4294967294, %v2272_v18 }
 0x340   :  { %v528_v33 = vsel %vm3510_vm4, %v2544_v44, %v523_v45  ;;  %vm624_vm2 = vmand %vm2637_vm1, %vm3511_vm14  ;;  %vm3516_vm14 = vcmp.lt.s32.totalorder %v2386_v55, 16 }
 0x341   :  { %vm2721_vm3 = vmand %vm2687_vm15, %vm3512_vm0  ;;  %v609_v8 = vpop.permute.xlu1 %608  ;;  %v1978_v15 = vpack.c.bf16 %v581_v63, %v528_v33  ;;  %v2894_v33 = vadd.s32 2, %v2272_v18  ;;  %v2912_v18 = vadd.s32 2, %v2270_v17  ;;  %v2920_v63 = vadd.s32 2, %v2276_v21 }
 0x342   :  { %vm3515_vm6 = vmmov %vm3510_vm4 }
 0x343   :  { %v529_v46 = vsel %vm3515_vm6, %v519_v28, %v2544_v44  ;;  %vm1974_vm4 = vmpackc.low %vm2637_vm1, %vm2671_vm12  ;;  %vm3519_vm6 = vcmp.ge.s32.totalorder %v2335_v38, 0  ;;  %vm3521_vm1 = vcmp.lt.s32.totalorder %v2327_v36, 16  ;;  %v1981_v36 = vpack.c.bf16 %v580_v62, %v527_v11 }
 0x344   :  { %1976 = vmatprep.subr.msk.bf16.mxu1 %vm1974_vm4, %v1975_v29  ;;  %vm2739_vm0 = vmand %vm624_vm2, %vm3516_vm14  ;;  %vm3524_vm4 = vcmp.lt.s32.totalorder %v2239_v56, 111  ;;  %v1984_v20 = vpack.c.bf16 %v582_v59, %v529_v46  ;;  %v3544_v46 = vmov 0 }
 0x345   :  { %vm622_vm7 = vmand %vm2659_vm11, %vm3519_vm6  ;;  %v620_v10 = vsel %vm3524_vm4, %v615_v6, %v609_v8  ;;  %v613_v23 = vpop.permute.xlu1 %612 }
 0x346   :  { %vm623_vm12 = vmand %vm2665_vm8, %vm3520_vm9 }
 0x347   :  { %vm2755_vm2 = vmand %vm2687_vm15, %vm3521_vm1  ;;  %vm3526_vm1 = vcmp.lt.s32.totalorder %v2335_v38, 16  ;;  %v2094_v38 = vmov 1.0  }
 0x348   :  { %vm1977_vm14 = vmpackc.low %vm2659_vm11, %vm2693_vm10  ;;  %vm3527_vm11 = vcmp.lt.s32.totalorder %v2338_v39, 16  ;;  %v1987_v24 = vpack.c.bf16 %v2094_v38, %v620_v10 }
 0x349   :  { %1979 = vmatprep.subr.msk.bf16.mxu0 %vm1977_vm14, %v1978_v15  ;;  %vm1980_vm9 = vmpackc.low %vm2665_vm8, %vm2701_vm5 }
 0x34a   :  { %1982 = vmatpush1.bf16.msk.msra.mxu1 %vm1980_vm9, %v1981_v36  ;;  %vm3525_vm6 = vmmov %vm3524_vm4 }
 0x34b   :  { %v619_v19 = vsel %vm3525_vm6, %v609_v8, %v611_v58  ;;  %vm626_vm4 = vmand %vm622_vm7, %vm3526_vm1  ;;  %vm3530_vm7 = vcmp.eq.s32.totalorder %v2228_v54, 0 }
 0x34c   :  { %vm1983_vm10 = vmpackc.low %vm2687_vm15, %vm2721_vm3  ;;  %v1996_v35 = vpack.c.bf16 %v2094_v38, %v619_v19 }
 0x34d   :  { %1985 = vmatpush1.bf16.msk.msra.mxu0 %vm1983_vm10, %v1984_v20  ;;  %vm627_vm14 = vmand %vm623_vm12, %vm3527_vm11 }
 0x34e   :  { %vm3528_vm5 = vmmov %vm3525_vm6 }
 0x34f   :  { %v617_v30 = vsel %vm3528_vm5, %v613_v23, %v615_v6  ;;  %vm3529_vm8 = vmmov %vm3528_vm5  ;;  %vm851_vm5 = vcmp.ge.s32.totalorder %v847_v42, 0 }
 0x350   :  { %v618_v32 = vsel %vm3529_vm8, %v611_v58, %v613_v23  ;;  %vm1986_vm9 = vmpackc.low %vm3530_vm7, %vm2739_vm0  ;;  %v1993_v34 = vpack.c.bf16 %v2094_v38, %v617_v30  ;;  %vm3397_vm0 = vcmask 654336   ;;  %vm855_vm8 = vcmp.lt.s32.totalorder %v847_v42, 16 }
 0x351   :  { %1988 = vmatprep.subr.msk.bf16.mxu1 %vm1986_vm9, %v1987_v24  ;;  %vm3531_vm15 = vmmov %vm3530_vm7  ;;  %v1990_v39 = vpack.c.bf16 %v2094_v38, %v618_v32  ;;  %vm3398_vm9 = vcmp.lt.s32.totalorder %v2844_v49, 16  ;;  %v3571_v42 = vmov 0 }
 0x352   :  { %vm1989_vm3 = vmpackc.low %vm3531_vm15, %vm626_vm4  ;;  %vm854_vm4 = vcmp.lt.s32.totalorder %v846_v41, 16 }
 0x353   :  { %1991 = vmatprep.subr.msk.bf16.mxu0 %vm1989_vm3, %v1990_v39  ;;  %vm3532_vm12 = vmmov %vm3530_vm7  ;;  %vm3400_vm3 = vcmp.ge.s32.totalorder %v2853_v43, 0 }
 0x354   :  { %vm1992_vm6 = vmpackc.low %vm3532_vm12, %vm627_vm14  ;;  %vm3399_vm14 = vcmp.ge.s32.totalorder %v2844_v49, 0  ;;  %vm852_vm12 = vcmp.ge.s32.totalorder %v848_v52, 0 }
 0x355   :  { %1994 = vmatpush1.bf16.msk.msra.mxu1 %vm1992_vm6, %v1993_v34  ;;  %vm3533_vm1 = vmmov %vm3530_vm7  ;;  %vm856_vm6 = vcmp.lt.s32.totalorder %v848_v52, 16 }
 0x356   :  { %vm1995_vm10 = vmpackc.low %vm3533_vm1, %vm2755_vm2  ;;  %vm850_vm2 = vcmp.ge.s32.totalorder %v846_v41, 0 }
 0x357   :  { %1997 = vmatpush1.bf16.msk.msra.mxu0 %vm1995_vm10, %v1996_v35  ;;  %vm2847_vm11 = vmand %vm850_vm2, %vm854_vm4  ;;  %vm849_vm10 = vcmp.ge.s32.totalorder %v845_v48, 0  ;;  %vm853_vm2 = vcmp.lt.s32.totalorder %v845_v48, 16  ;;  %vm3403_vm4 = vcmp.lt.s32.totalorder %v2239_v56, 34  ;;  %v3565_v35 = vmov 0 }
 0x358   :  { %1778 = vmatmul.mubr.msk.f32.vlgmr.msra.gmra.mrb[2].mxu1 %vm3397_vm0, %v645_v37  ;;  %vm870_vm7 = vmand %vm2847_vm11, %vm3399_vm14  ;;  %vm3404_vm14 = vcmp.ge.s32.totalorder %v2871_v53, 0 }
 0x359   :  { %1367 = vmatprep.mubr.f32.mxu1 %v2082_v3  ;;  %vm2862_vm15 = vmand %vm851_vm5, %vm855_vm8  ;;  %vm3401_vm8 = vcmp.lt.s32.totalorder %v2853_v43, 16 }
 0x35a   :  { %1777 = vmatmul.mubr.msk.f32.vlgmr.msra.gmra.mrb[2].mxu0 %vm3397_vm0, %v645_v37  ;;  %vm2875_vm1 = vmand %vm870_vm7, %vm3398_vm9  ;;  %vm3402_vm0 = vcmp.ge.s32.totalorder %v2868_v50, 0 }
 0x35b   :  { %1296 = vmatprep.mubr.f32.mxu0 %v2082_v3  ;;  %vm871_vm5 = vmand %vm2862_vm15, %vm3400_vm3  ;;  %vm3405_vm3 = vcmp.lt.s32.totalorder %v2239_v56, 32 }
 0x35c   :  { %vm2888_vm7 = vmand %vm852_vm12, %vm856_vm6  ;;  %vm3406_vm6 = vcmp.ge.s32.totalorder %v2880_v22, 0 }
 0x35d   :  { %vm2896_vm9 = vmand %vm849_vm10, %vm853_vm2  ;;  %vm3407_vm2 = vcmp.lt.s32.totalorder %v2868_v50, 16 }
 0x35e   :  { %vm2906_vm12 = vmand %vm871_vm5, %vm3401_vm8  ;;  %vm3552_vm8 = vcmp.lt.s32.totalorder %v2239_v56, 34 }
 0x35f   :  { %v3545_v46 = vsel %vm2906_vm12, 4294967295, %v3544_v46  ;;  %vm872_vm10 = vmand %vm2888_vm7, %vm3402_vm0 }
 0x360   :  { %vm2926_vm5 = vmand %vm2896_vm9, %vm3404_vm14  ;;  %vm3555_vm14 = vcmp.lt.s32.totalorder %v2239_v56, 32 }
 0x361   :  { %vm3553_vm0 = vmmov %vm3552_vm8 }
 0x362   :  { %vm3554_vm12 = vmmov %vm3553_vm0 }
 0x42b   :  { %v2802_v40 = vpop.f32.mrb[2].mxu1 }
 0x42c   :  { %v2806_v54 = vpop.f32.mrb[3].mxu1 }
 0x42d   :  { %v2804_v28 = vpop.f32.mrb[2].mxu0 }
 0x42e   :  { %832 = vrot.lane.b32.xlu1 %v2804_v28, %s2095_s17  ;;  %v2809_v7 = vpop.f32.mrb[3].mxu0 }
 0x42f   :  { %834 = vrot.lane.b32.xlu0 %v2809_v7, %s2095_s17 }
 0x432   :  { %836 = vrot.lane.b32.xlu1 %v2802_v40, %s2095_s17 }
 0x433   :  { %838 = vrot.lane.b32.xlu0 %v2806_v54, %s2095_s17 }
 0x436   :  { %897 = vrot.lane.b32.xlu1 %v2804_v28, %s2096_s3 }
 0x437   :  { %899 = vrot.lane.b32.xlu0 %v2809_v7, %s2096_s3 }
 0x43a   :  { %901 = vrot.lane.b32.xlu1 %v2802_v40, %s2096_s3 }
 0x43b   :  { %903 = vrot.lane.b32.xlu0 %v2806_v54, %s2096_s3 }
 0x43e   :  { %934 = vrot.lane.b32.xlu1 %v2804_v28, %s2097_s18 }
 0x43f   :  { %936 = vrot.lane.b32.xlu0 %v2809_v7, %s2097_s18 }
 0x442   :  { %938 = vrot.lane.b32.xlu1 %v2802_v40, %s2097_s18 }
 0x443   :  { %940 = vrot.lane.b32.xlu0 %v2806_v54, %s2097_s18 }
 0x446   :  { %983 = vrot.lane.b32.xlu1 %v2804_v28, %s2098_s19 }
 0x447   :  { %985 = vrot.lane.b32.xlu0 %v2809_v7, %s2098_s19 }
 0x44a   :  { %987 = vrot.lane.b32.xlu1 %v2802_v40, %s2098_s19 }
 0x44b   :  { %989 = vrot.lane.b32.xlu0 %v2806_v54, %s2098_s19 }
 0x44e   :  { %1024 = vrot.lane.b32.xlu1 %v2804_v28, %s2099_s20 }
 0x44f   :  { %1026 = vrot.lane.b32.xlu0 %v2809_v7, %s2099_s20 }
 0x452   :  { %1028 = vrot.lane.b32.xlu1 %v2802_v40, %s2099_s20 }
 0x453   :  { %1030 = vrot.lane.b32.xlu0 %v2806_v54, %s2099_s20 }
 0x456   :  { %1061 = vrot.lane.b32.xlu1 %v2804_v28, %s2100_s21 }
 0x457   :  { %1063 = vrot.lane.b32.xlu0 %v2809_v7, %s2100_s21 }
 0x45a   :  { %1065 = vrot.lane.b32.xlu1 %v2802_v40, %s2100_s21 }
 0x45b   :  { %1067 = vrot.lane.b32.xlu0 %v2806_v54, %s2100_s21 }
 0x45e   :  { %1114 = vrot.lane.b32.xlu1 %v2804_v28, %s2101_s22 }
 0x45f   :  { %1116 = vrot.lane.b32.xlu0 %v2809_v7, %s2101_s22 }
 0x462   :  { %1118 = vrot.lane.b32.xlu1 %v2802_v40, %s2101_s22 }
 0x463   :  { %1120 = vrot.lane.b32.xlu0 %v2806_v54, %s2101_s22 }
 0x466   :  { %1151 = vrot.lane.b32.xlu1 %v2804_v28, %s2102_s23 }
 0x467   :  { %1153 = vrot.lane.b32.xlu0 %v2809_v7, %s2102_s23 }
 0x46a   :  { %1155 = vrot.lane.b32.xlu1 %v2802_v40, %s2102_s23 }
 0x46b   :  { %1157 = vrot.lane.b32.xlu0 %v2806_v54, %s2102_s23 }
 0x4a0   :  { %v833_v45 = vpop.permute.xlu1 %832 }
 0x4a1   :  { %v835_v47 = vpop.permute.xlu0 %834 }
 0x4a2   :  { %v843_v26 = vsel %vm3403_vm4, %v833_v45, %v835_v47  ;;  %vm2940_vm4 = vmand %vm2847_vm11, %vm3406_vm6 }
 0x4a4   :  { %v837_v58 = vpop.permute.xlu1 %836 }
 0x4a5   :  { %v839_v59 = vpop.permute.xlu0 %838  ;;  %v842_v15 = vsel %vm3554_vm12, %v835_v47, %v837_v58  ;;  %vm3559_vm12 = vmmov %vm3555_vm14 }
 0x4a6   :  { %v841_v8 = vsel %vm3552_vm8, %v837_v58, %v839_v59  ;;  %v844_v55 = vsel %vm3553_vm0, %v839_v59, %v833_v45  ;;  %vm3408_vm8 = vcmp.lt.s32.totalorder %v2912_v18, 16  ;;  %vm1998_vm0 = vmpackc.low %vm2847_vm11, %vm2875_vm1  ;;  %v3584_v58 = vmov 0 }
 0x4a8   :  { %v898_v61 = vpop.permute.xlu1 %897 }
 0x4a9   :  { %v900_v62 = vpop.permute.xlu0 %899 }
 0x4aa   :  { %v908_v17 = vsel %vm3405_vm3, %v898_v61, %v900_v62  ;;  %vm2947_vm3 = vmand %vm872_vm10, %vm3407_vm2  ;;  %vm3556_vm10 = vcmp.ge.s32.totalorder %v2894_v33, 0 }
 0x4ab   :  { %v927_v44 = vsel %vm2847_vm11, %v908_v17, 0.0  ;;  %vm2964_vm2 = vmand %vm2862_vm15, %vm3556_vm10  ;;  %vm3560_vm10 = vcmp.lt.s32.totalorder %v2880_v22, 16  ;;  %vm3564_vm11 = vcmp.lt.s32.totalorder %v2894_v33, 16 }
 0x4ac   :  { %931 = vst [vmem:[#allocation2 + $0x28] sm:$0xff] %v927_v44  ;;  %v902_v10 = vpop.permute.xlu1 %901  ;;  %vm2981_vm6 = vmand %vm2940_vm4, %vm3560_vm10  ;;  %vm3563_vm4 = vcmp.ge.s32.totalorder %v2912_v18, 0  ;;  %vm3570_vm10 = vcmp.lt.s32.totalorder %v2239_v56, 30  ;;  %v1075_v44 = vadd.s32 2, %v2244_v60  ;;  %v1076_v60 = vadd.s32 2, %v2261_v13 }
 0x4ad   :  { %v907_v36 = vsel %vm3555_vm14, %v900_v62, %v902_v10  ;;  %v904_v19 = vpop.permute.xlu0 %903  ;;  %1572 = vst [vmem:[#allocation2 + $0x28] sm:$0xf] %v2158_v2  ;;  %v1999_v2 = vpack.c.bf16 %v908_v17, %v843_v26  ;;  %vm3003_vm1 = vmand %vm2964_vm2, %vm3564_vm11  ;;  %v1074_v26 = vadd.s32 2, %v2263_v14  ;;  %v3597_v14 = vmov 0 }
 0x4ae   :  { %v928_v23 = vsel %vm2862_vm15, %v907_v36, 0.0  ;;  %v906_v30 = vsel %vm3555_vm14, %v902_v10, %v904_v19  ;;  %v909_v32 = vsel %vm3559_vm12, %v904_v19, %v898_v61  ;;  %vm958_vm14 = vmand %vm2888_vm7, %vm3563_vm4  ;;  %v3566_v35 = vsel %vm3003_vm1, 4294967295, %v3565_v35 }
 0x4af   :  { %2000 = vmatprep.subr.msk.bf16.mxu0 %vm1998_vm0, %v1999_v2  ;;  %932 = vst [vmem:[#allocation2 + $0x30] sm:$0xff] %v928_v23  ;;  %v926_v24 = vsel %vm2896_vm9, %v909_v32, 0.0  ;;  %v929_v39 = vsel %vm2888_vm7, %v906_v30, 0.0  ;;  %vm3567_vm0 = vcmp.lt.s32.totalorder %v2920_v63, 16  ;;  %vm3021_vm2 = vmand %vm958_vm14, %vm3408_vm8  ;;  %v2008_v51 = vpack.c.bf16 %v907_v36, %v842_v15 }
 0x4b0   :  { %1573 = vst [vmem:[#allocation2 + $0x30] sm:$0xf] %v2154_v1  ;;  %930 = vst [vmem:[#allocation2 + $0x20] sm:$0xff] %v926_v24  ;;  %v935_v34 = vpop.permute.xlu1 %934  ;;  %v3572_v42 = vsel %vm3021_vm2, 4294967295, %v3571_v42  ;;  %v3614_v19 = vmov 0  ;;  %v3644_v61 = vmov 0 }
 0x4b1   :  { %933 = vst [vmem:[#allocation2 + $0x38] sm:$0xff] %v929_v39  ;;  %1571 = vst [vmem:[#allocation2 + $0x20] sm:$0xf] %v2149_v0  ;;  %v937_v37 = vpop.permute.xlu0 %936  ;;  %v2002_v0 = vpack.c.bf16 %v909_v32, %v844_v55  ;;  %v3625_v39 = vmov 0  ;;  %v1936_v55 = vld [vmem:[#allocation2 + $0x138] sm:$0xff] }
 0x4b2   :  { %vm3012_vm12 = vmand %vm2896_vm9, %vm3567_vm0  ;;  %1574 = vst [vmem:[#allocation2 + $0x38] sm:$0xf] %v2163_v4  ;;  %v945_v41 = vsel %vm3570_vm10, %v935_v34, %v937_v37  ;;  %v2005_v4 = vpack.c.bf16 %v906_v30, %v841_v8  ;;  %vm3573_vm0 = vcmp.ge.s32.totalorder %v2844_v49, 0  ;;  %vm3574_vm10 = vnez %v3545_v46 }
 0x4b3   :  { %vm2001_vm4 = vmpackc.low %vm2896_vm9, %vm2926_vm5  ;;  %vm3575_vm9 = vcmp.ge.s32.totalorder %v2853_v43, 0  ;;  %vm3576_vm5 = vnez %v3452_v27  ;;  %v1077_v8 = vadd.s32 2, %v2259_v12  ;;  %v2103_v12 = vmov 2  }
 0x4b4   :  { %2003 = vmatpush1.bf16.msk.msra.mxu0 %vm2001_vm4, %v2002_v0  ;;  %vm2004_vm11 = vmpackc.low %vm2888_vm7, %vm2947_vm3  ;;  %v939_v52 = vpop.permute.xlu1 %938  ;;  %vm3577_vm7 = vcmp.lt.s32.totalorder %v2239_v56, 30  ;;  %1914 = vset.pattern.permute.xlu1 %v2103_v12 }
 0x4b5   :  { %2006 = vmatprep.subr.msk.bf16.mxu1 %vm2004_vm11, %v2005_v4  ;;  %vm997_vm14 = vmand %vm3473_vm13, %vm3573_vm0  ;;  %v944_v45 = vsel %vm3577_vm7, %v937_v37, %v939_v52  ;;  %v941_v48 = vpop.permute.xlu0 %940 }
 0x4b6   :  { %vm2007_vm8 = vmpackc.low %vm2862_vm15, %vm3574_vm10  ;;  %vm3580_vm15 = vcmp.lt.s32.totalorder %v2844_v49, 16  ;;  %vm3583_vm10 = vcmp.lt.s32.totalorder %v2853_v43, 16 }
 0x4b7   :  { %2009 = vmatpush1.bf16.msk.msra.mxu1 %vm2007_vm8, %v2008_v51  ;;  %vm998_vm3 = vmand %vm3576_vm5, %vm3575_vm9  ;;  %vm991_vm8 = vcmp.lt.s32.totalorder %v2239_v56, 2 }
 0x4b8   :  { %vm3578_vm4 = vmmov %vm3577_vm7  ;;  %v984_v59 = vpop.permute.xlu1 %983  ;;  %vm3586_vm7 = vcmp.ge.s32.totalorder %v2868_v50, 0 }
 0x4b9   :  { %v943_v47 = vsel %vm3578_vm4, %v939_v52, %v941_v48  ;;  %vm3579_vm11 = vmmov %vm3578_vm4  ;;  %vm3587_vm4 = vnez %v3454_v31  ;;  %v986_v11 = vpop.permute.xlu0 %985 }
 0x4ba   :  { %v946_v57 = vsel %vm3579_vm11, %v941_v48, %v935_v34  ;;  %vm3053_vm0 = vmand %vm997_vm14, %vm3580_vm15  ;;  %vm3588_vm14 = vcmp.ge.s32.totalorder %v2871_v53, 0  ;;  %vm3589_vm15 = vnez %v3435_v9  ;;  %v994_v46 = vsel %vm991_vm8, %v984_v59, %v986_v11 }
 0x4bb   :  { %vm3060_vm9 = vmand %vm998_vm3, %vm3583_vm10  ;;  %vm3592_vm3 = vcmp.ge.s32.totalorder %v2880_v22, 0  ;;  %v2011_v6 = vpack.c.bf16 %v994_v46, %v945_v41 }
 0x4bc   :  { %v3585_v58 = vsel %vm3060_vm9, 4294967295, %v3584_v58  ;;  %vm999_vm11 = vmand %vm3587_vm4, %vm3586_vm7  ;;  %vm3593_vm7 = vcmp.lt.s32.totalorder %v2868_v50, 16  ;;  %v988_v62 = vpop.permute.xlu1 %987 }
 0x4bd   :  { %vm3072_vm1 = vmand %vm3589_vm15, %vm3588_vm14  ;;  %vm3596_vm14 = vcmp.lt.s32.totalorder %v2920_v63, 16  ;;  %v993_v29 = vsel %vm991_vm8, %v986_v11, %v988_v62  ;;  %v990_v16 = vpop.permute.xlu0 %989 }
 0x4be   :  { %vm1038_vm10 = vmand %vm3473_vm13, %vm3592_vm3  ;;  %vm3599_vm13 = vcmp.lt.s32.totalorder %v2880_v22, 16  ;;  %v992_v9 = vsel %vm991_vm8, %v988_v62, %v990_v16  ;;  %v995_v21 = vsel %vm991_vm8, %v990_v16, %v984_v59  ;;  %v2020_v20 = vpack.c.bf16 %v993_v29, %v944_v45 }
 0x4bf   :  { %vm3085_vm9 = vmand %vm999_vm11, %vm3593_vm7  ;;  %vm1078_vm11 = vcmp.ge.s32.totalorder %v1074_v26, 0  ;;  %vm1082_vm7 = vcmp.lt.s32.totalorder %v1074_v26, 16  ;;  %v2014_v31 = vpack.c.bf16 %v995_v21, %v946_v57  ;;  %v2017_v36 = vpack.c.bf16 %v992_v9, %v943_v47 }
 0x4c0   :  { %vm3093_vm2 = vmand %vm3589_vm15, %vm3596_vm14  ;;  %vm3602_vm15 = vcmp.ge.s32.totalorder %v2894_v33, 0  ;;  %v1025_v27 = vpop.permute.xlu1 %1024 }
 0x4c1   :  { %v3598_v14 = vsel %vm3093_vm2, 4294967295, %v3597_v14  ;;  %vm3101_vm3 = vmand %vm1038_vm10, %vm3599_vm13  ;;  %vm3409_vm13 = vcmp.lt.s32.totalorder %v2239_v56, 126  ;;  %vm3603_vm2 = vcmp.ge.s32.totalorder %v2912_v18, 0  ;;  %v1027_v10 = vpop.permute.xlu0 %1026 }
 0x4c2   :  { %vm1039_vm14 = vmand %vm3576_vm5, %vm3602_vm15  ;;  %vm1079_vm15 = vcmp.ge.s32.totalorder %v1075_v44, 0  ;;  %v1035_v13 = vsel %vm3409_vm13, %v1025_v27, %v1027_v10  ;;  %vm1084_vm13 = vcmp.lt.s32.totalorder %v1076_v60, 16 }
 0x4c3   :  { %vm2010_vm10 = vmpackc.low %vm3053_vm0, %vm2981_vm6  ;;  %vm3606_vm6 = vcmp.lt.s32.totalorder %v2894_v33, 16  ;;  %v2026_v0 = vpack.c.bf16 %v1035_v13, %v2804_v28 }
 0x4c4   :  { %2012 = vmatprep.subr.msk.bf16.mxu0 %vm2010_vm10, %v2011_v6  ;;  %vm1040_vm8 = vmand %vm3587_vm4, %vm3603_vm2  ;;  %vm1083_vm10 = vcmp.lt.s32.totalorder %v1075_v44, 16  ;;  %vm3609_vm2 = vcmp.lt.s32.totalorder %v2912_v18, 16  ;;  %v1029_v23 = vpop.permute.xlu1 %1028 }
 0x4c5   :  { %vm3125_vm5 = vmand %vm1078_vm11, %vm1082_vm7  ;;  %vm3612_vm7 = vnez %v3572_v42  ;;  %v1031_v32 = vpop.permute.xlu0 %1030 }
 0x4c6   :  { %vm3131_vm0 = vmand %vm1039_vm14, %vm3606_vm6  ;;  %vm1080_vm6 = vcmp.ge.s32.totalorder %v1076_v60, 0 }
 0x4c7   :  { %vm3139_vm4 = vmand %vm1040_vm8, %vm3609_vm2  ;;  %vm3613_vm8 = vcmp.ge.s32.totalorder %v2871_v53, 0 }
 0x4c8   :  { %vm2013_vm11 = vmpackc.low %vm3072_vm1, %vm3012_vm12  ;;  %vm3616_vm1 = vnez %v3566_v35  ;;  %vm3617_vm12 = vnez %v3585_v58  ;;  %v1062_v34 = vpop.permute.xlu1 %1061 }
 0x4c9   :  { %2015 = vmatpush1.bf16.msk.msra.mxu0 %vm2013_vm11, %v2014_v31  ;;  %vm2016_vm14 = vmpackc.low %vm3085_vm9, %vm3612_vm7  ;;  %vm1081_vm9 = vcmp.ge.s32.totalorder %v1077_v8, 0  ;;  %vm1085_vm7 = vcmp.lt.s32.totalorder %v1077_v8, 16  ;;  %v1064_v35 = vpop.permute.xlu0 %1063  ;;  %v1937_v31 = vld [vmem:[%s3363_s1] sm:$0xff] }
 0x4ca   :  { %2018 = vmatprep.subr.msk.bf16.mxu1 %vm2016_vm14, %v2017_v36  ;;  %vm3155_vm2 = vmand %vm3125_vm5, %vm3613_vm8  ;;  %vm3620_vm8 = vcmp.lt.s32.totalorder %v2239_v56, 126  ;;  %1377 = vperm.xlu1 %1914, %v1937_v31  }
 0x4cb   :  { %v3615_v19 = vsel %vm3155_vm2, 4294967295, %v3614_v19  ;;  %vm2019_vm11 = vmpackc.low %vm3617_vm12, %vm3616_vm1  ;;  %v1034_v30 = vsel %vm3620_vm8, %v1027_v10, %v1029_v23 }
 0x4cc   :  { %2021 = vmatpush1.bf16.msk.msra.mxu1 %vm2019_vm11, %v2020_v20  ;;  %vm3165_vm14 = vmand %vm1079_vm15, %vm1083_vm10  ;;  %vm1069_vm15 = vcmp.lt.s32.totalorder %v2239_v56, 98  ;;  %vm3627_vm10 = vcmp.ge.s32.totalorder %v2844_v49, 0  ;;  %v2023_v1 = vpack.c.bf16 %v1034_v30, %v2809_v7  ;;  %v1066_v52 = vpop.permute.xlu1 %1065  ;;  %v2104_v30 = vmov 3  }
 0x4cd   :  { %vm3171_vm2 = vmand %vm1080_vm6, %vm1084_vm13  ;;  %vm3628_vm6 = vcmp.ge.s32.totalorder %v2853_v43, 0  ;;  %v1072_v41 = vsel %vm1069_vm15, %v1062_v34, %v1064_v35  ;;  %v1068_v48 = vpop.permute.xlu0 %1067  ;;  %1915 = vset.pattern.permute.xlu0 %v2104_v30 }
 0x4ce   :  { %vm3623_vm1 = vmmov %vm3620_vm8  ;;  %v1070_v47 = vsel %vm1069_vm15, %v1066_v52, %v1068_v48  ;;  %v1073_v57 = vsel %vm1069_vm15, %v1068_v48, %v1062_v34  ;;  %1585 = vperm.xlu0 %1915, %v1937_v31  }
 0x4cf   :  { %v1033_v2 = vsel %vm3623_vm1, %v1029_v23, %v1031_v32  ;;  %vm3624_vm12 = vmmov %vm3623_vm1  ;;  %vm3629_vm1 = vcmp.ge.s32.totalorder %v2868_v50, 0  ;;  %v1374_v23 = vld [vmem:[%s3367_s5] sm:$0xff] }
 0x4d0   :  { %v1036_v24 = vsel %vm3624_vm12, %v1031_v32, %v1025_v27  ;;  %vm3179_vm11 = vmand %vm1081_vm9, %vm1085_vm7  ;;  %vm3632_vm7 = vmmov 1   ;;  %v2032_v51 = vpack.c.bf16 %v1033_v2, %v2802_v40  ;;  %v1115_v25 = vpop.permute.xlu1 %1114 }
 0x4d1   :  { %v3626_v39 = vsel %vm3179_vm11, 4294967295, %v3625_v39  ;;  %vm1091_vm13 = vmand %vm3165_vm14, %vm3627_vm10  ;;  %vm3633_vm10 = vcmp.lt.s32.totalorder %v2844_v49, 16  ;;  %v2029_v4 = vpack.c.bf16 %v1036_v24, %v2806_v54 }
 0x4d2   :  { %vm1092_vm8 = vmand %vm3171_vm2, %vm3628_vm6 }
 0x4d3   :  { %vm3196_vm9 = vmand %vm3179_vm11, %vm3629_vm1  ;;  %vm3636_vm1 = vnez %v3598_v14  ;;  %v1581_v14 = vld [vmem:[#allocation2 + $0x30] sm:$0xf] }
 0x4d4   :  { %vm2022_vm12 = vmpackc.low %vm3101_vm3, %vm3632_vm7  ;;  %v1119_v59 = vpop.permute.xlu1 %1118 }
 0x4d5   :  { %2024 = vmatprep.subr.msk.bf16.mxu0 %vm2022_vm12, %v2023_v1  ;;  %vm3208_vm6 = vmand %vm1091_vm13, %vm3633_vm10  ;;  %vm3637_vm12 = vcmp.lt.s32.totalorder %v2853_v43, 16  ;;  %v1071_v43 = vsel %vm1069_vm15, %v1064_v35, %v1066_v52  ;;  %vm1159_vm15 = vcmp.lt.s32.totalorder %v2239_v56, 94 }
 0x4d6   :  { %vm2025_vm11 = vmpackc.low %vm3636_vm1, %vm3632_vm7  ;;  %vm3646_vm1 = vcmp.ge.s32.totalorder %v2880_v22, 0 }
 0x4d7   :  { %2027 = vmatpush1.bf16.msk.msra.mxu0 %vm2025_vm11, %v2026_v0  ;;  %vm2028_vm3 = vmpackc.low %vm3139_vm4, %vm3632_vm7  ;;  %vm3640_vm11 = vcmp.lt.s32.totalorder %v2868_v50, 16  ;;  %v1117_v50 = vpop.permute.xlu0 %1116 }
 0x4d8   :  { %2030 = vmatprep.subr.msk.bf16.mxu1 %vm2028_vm3, %v2029_v4  ;;  %vm3222_vm13 = vmand %vm1092_vm8, %vm3637_vm12  ;;  %vm3643_vm8 = vcmp.lt.s32.totalorder %v2920_v63, 16  ;;  %v1152_v62 = vpop.permute.xlu1 %1151  ;;  %vm3647_vm12 = vcmp.ge.s32.totalorder %v2894_v33, 0 }
 0x4d9   :  { %vm2031_vm10 = vmpackc.low %vm3131_vm0, %vm3632_vm7  ;;  %vm1122_vm0 = vcmp.lt.s32.totalorder %v2239_v56, 96  ;;  %v1188_v56 = vld [vmem:[%s3366_s4] sm:$0xf] }
 0x4da   :  { %2033 = vmatpush1.bf16.msk.msra.mxu1 %vm2031_vm10, %v2032_v51  ;;  %vm3234_vm4 = vmand %vm3196_vm9, %vm3640_vm11  ;;  %v1125_v58 = vsel %vm1122_vm0, %v1115_v25, %v1117_v50  ;;  %v1124_v11 = vsel %vm1122_vm0, %v1117_v50, %v1119_v59  ;;  %vm3648_vm11 = vcmp.ge.s32.totalorder %v2912_v18, 0 }
 0x4db   :  { %v1121_v5 = vpop.permute.xlu0 %1120  ;;  %vm3249_vm9 = vmand %vm3125_vm5, %vm3643_vm8  ;;  %v2035_v29 = vpack.c.bf16 %v1124_v11, %v1071_v43  ;;  %v2038_v44 = vpack.c.bf16 %v1125_v58, %v1072_v41  ;;  %v1580_v58 = vld [vmem:[#allocation2 + $0x28] sm:$0xf] }
 0x4dc   :  { %v1123_v26 = vsel %vm1122_vm0, %v1119_v59, %v1121_v5  ;;  %v1126_v46 = vsel %vm1122_vm0, %v1121_v5, %v1115_v25  ;;  %v3645_v61 = vsel %vm3249_vm9, 4294967295, %v3644_v61  ;;  %vm1165_vm3 = vmand %vm3165_vm14, %vm3646_vm1  ;;  %vm3649_vm0 = vnez %v3626_v39  ;;  %v1156_v6 = vpop.permute.xlu1 %1155  ;;  %v1579_v5 = vld [vmem:[#allocation2 + $0x20] sm:$0xf] }
 0x4dd   :  { %vm1166_vm10 = vmand %vm3171_vm2, %vm3647_vm12  ;;  %vm3652_vm12 = vcmp.lt.s32.totalorder %v2880_v22, 16  ;;  %v2041_v9 = vpack.c.bf16 %v1126_v46, %v1073_v57  ;;  %v2044_v21 = vpack.c.bf16 %v1123_v26, %v1070_v47 }
 0x4de   :  { %vm3266_vm8 = vmand %vm3649_vm0, %vm3648_vm11  ;;  %vm3655_vm11 = vnez %v3615_v19 }
 0x4df   :  { %v1154_v63 = vpop.permute.xlu0 %1153  ;;  %vm2034_vm1 = vmpackc.low %vm3165_vm14, %vm3208_vm6  ;;  %vm3656_vm6 = vcmp.lt.s32.totalorder %v2894_v33, 16 }
 0x4e0   :  { %2036 = vmatprep.subr.msk.bf16.mxu0 %vm2034_vm1, %v2035_v29  ;;  %v1162_v16 = vsel %vm1159_vm15, %v1152_v62, %v1154_v63  ;;  %vm3278_vm9 = vmand %vm1165_vm3, %vm3652_vm12  ;;  %v1161_v33 = vsel %vm1159_vm15, %v1154_v63, %v1156_v6  ;;  %vm3664_vm12 = vcmask 1043456  }
 0x4e1   :  { %vm2037_vm7 = vmpackc.low %vm3125_vm5, %vm3655_vm11  ;;  %v2047_v10 = vpack.c.bf16 %v1936_v55, %v1161_v33 }
 0x4e2   :  { %2039 = vmatpush1.bf16.msk.msra.mxu0 %vm2037_vm7, %v2038_v44  ;;  %vm2040_vm14 = vmpackc.low %vm3649_vm0, %vm3234_vm4  ;;  %vm3659_vm7 = vcmp.lt.s32.totalorder %v2912_v18, 16  ;;  %v2050_v18 = vpack.c.bf16 %v1936_v55, %v1162_v16 }
 0x4e3   :  { %2042 = vmatprep.subr.msk.bf16.mxu1 %vm2040_vm14, %v2041_v9  ;;  %vm3292_vm3 = vmand %vm1166_vm10, %vm3656_vm6  ;;  %v1158_v60 = vpop.permute.xlu0 %1157  ;;  %vm3661_vm10 = vnez %v3645_v61  ;;  %vm3667_vm6 = vcmask 31744   ;;  %v1582_v61 = vld [vmem:[#allocation2 + $0x38] sm:$0xf] }
 0x4e4   :  { %vm2043_vm5 = vmpackc.low %vm3171_vm2, %vm3222_vm13  ;;  %v1160_v8 = vsel %vm1159_vm15, %v1156_v6, %v1158_v60  ;;  %v1163_v27 = vsel %vm1159_vm15, %v1158_v60, %v1152_v62  ;;  %vm3660_vm2 = vmmov 1   ;;  %vm3662_vm15 = vcmask 654336  }
 0x4e5   :  { %2045 = vmatpush1.bf16.msk.msra.mxu1 %vm2043_vm5, %v2044_v21  ;;  %vm1171_vm4 = vmand %vm3266_vm8, %vm3659_vm7  ;;  %v2053_v15 = vpack.c.bf16 %v1936_v55, %v1163_v27  ;;  %v2056_v13 = vpack.c.bf16 %v1936_v55, %v1160_v8 }
 0x4e6   :  { %vm2046_vm13 = vmpackc.low %vm3660_vm2, %vm3278_vm9 }
 0x4e7   :  { %2048 = vmatprep.subr.msk.bf16.mxu0 %vm2046_vm13, %v2047_v10  ;;  %vm2049_vm0 = vmpackc.low %vm3660_vm2, %vm3661_vm10  ;;  %vm1588_vm13 = vcmask 97280  }
 0x4e8   :  { %2051 = vmatpush1.bf16.msk.msra.mxu0 %vm2049_vm0, %v2050_v18  ;;  %vm2052_vm8 = vmpackc.low %vm3660_vm2, %vm1171_vm4 }
 0x4e9   :  { %2054 = vmatprep.subr.msk.bf16.mxu1 %vm2052_vm8, %v2053_v15  ;;  %vm2055_vm9 = vmpackc.low %vm3660_vm2, %vm3292_vm3 }
 0x4ea   :  { %2057 = vmatpush1.bf16.msk.msra.mxu1 %vm2055_vm9, %v2056_v13  ;;  %vm3663_vm1 = vmmov %vm3662_vm15 }
 0x4eb   :  { %1779 = vmatmul.mubr.msk.f32.vlgmr.msra.gmra.mrb[4].mxu0 %vm3662_vm15, %v1188_v56  ;;  %vm3665_vm11 = vmmov %vm3664_vm12 }
 0x4ec   :  { %1459 = vmatprep.mubr.f32.mxu0 %v2082_v3  ;;  %vm3666_vm14 = vmmov %vm3665_vm11 }
 0x4ed   :  { %1780 = vmatmul.mubr.msk.f32.vlgmr.msra.gmra.mrb[4].mxu1 %vm3663_vm1, %v1188_v56  ;;  %vm3668_vm3 = vmmov %vm3665_vm11 }
 0x4ee   :  { %1530 = vmatprep.mubr.f32.mxu1 %v2082_v3  ;;  %vm3669_vm5 = vmmov %vm3667_vm6 }
 0x4ef   :  { %vm3670_vm7 = vmmov %vm3668_vm3 }
 0x4f0   :  { %vm1878_vm4 = vmpackc.low %vm3670_vm7, %vm3660_vm2 }
 0x549   :  { %v1378_v32 = vpop.permute.xlu1 %1377 }
 0x5be   :  { %v1298_v36 = vpop.f32.mrb[4].mxu0 }
 0x5bf   :  { %v1300_v19 = vpop.f32.mrb[5].mxu0 }
 0x5c0   :  { %v1369_v20 = vpop.f32.mrb[4].mxu1  ;;  %1781 = vmatprep.subr.msk.mxu0 %vm3664_vm12, %v1300_v19 }
 0x5c1   :  { %v1371_v53 = vpop.f32.mrb[5].mxu1  ;;  %1782 = vmatpush1.msk.msra.mxu0 %vm3665_vm11, %v1298_v36 }
 0x5c2   :  { %1784 = vmatprep.subr.msk.mxu1 %vm3666_vm14, %v1371_v53  ;;  %1783 = vmatmul.mubr.msk.f32.vlgmr.msra.gmra.mrb[6].mxu0 %vm3667_vm6, %v1374_v23 }
 0x5c3   :  { %1785 = vmatpush1.msk.msra.mxu1 %vm3668_vm3, %v1369_v20  ;;  %1668 = vmatprep.mubr.f32.mxu0 %v2082_v3 }
 0x5c4   :  { %1786 = vmatmul.mubr.msk.f32.vlgmr.msra.gmra.mrb[6].mxu1 %vm3669_vm5, %v1374_v23 }
 0x5c5   :  { %1739 = vmatprep.mubr.f32.mxu1 %v2082_v3 }
 0x695   :  { %v1461_v38 = vpop.f32.mrb[6].mxu0 }
 0x696   :  { %v1462_v2 = vadd.f32 %v1461_v38, %v1378_v32  ;;  %v1463_v24 = vpop.f32.mrb[7].mxu0 }
 0x697   :  { %v1532_v39 = vpop.f32.mrb[6].mxu1  ;;  %v1464_v34 = vadd.f32 %v1463_v24, %v1378_v32 }
 0x698   :  { %v1533_v35 = vadd.f32 %v1532_v39, %v1378_v32  ;;  %v1534_v37 = vpop.f32.mrb[7].mxu1  ;;  %v1787_v1 = vmul.f32 -1.442695, %v1462_v2 }
 0x699   :  { %v1535_v41 = vadd.f32 %v1534_v37, %v1378_v32  ;;  %v1788_v42 = vmul.f32 -1.442695, %v1464_v34 }
 0x69a   :  { %v1789_v0 = vmul.f32 -1.442695, %v1533_v35  ;;  %1920 = vpow2.f32 %v1787_v1 }
 0x69b   :  { %v1790_v4 = vmul.f32 -1.442695, %v1535_v41  ;;  %1922 = vpow2.f32 %v1788_v42 }
 0x69c   :  { %1924 = vpow2.f32 %v1789_v0 }
 0x69d   :  { %1926 = vpow2.f32 %v1790_v4 }
 0x6a4   :  { %v1921_v3 = vpop.eup %1920 }
 0x6a5   :  { %v1923_v49 = vpop.eup %1922  ;;  %v1549_v51 = vadd.f32 1.0, %v1921_v3 }
 0x6a6   :  { %v1925_v52 = vpop.eup %1924  ;;  %v1550_v45 = vadd.f32 1.0, %v1923_v49 }
 0x6a7   :  { %v1927_v43 = vpop.eup %1926  ;;  %1928 = vrcp.f32 %v1549_v51  ;;  %v1551_v48 = vadd.f32 1.0, %v1925_v52 }
 0x6a8   :  { %1930 = vrcp.f32 %v1550_v45  ;;  %v1552_v47 = vadd.f32 1.0, %v1927_v43 }
 0x6a9   :  { %1932 = vrcp.f32 %v1551_v48 }
 0x6aa   :  { %1934 = vrcp.f32 %v1552_v47 }
 0x6b1   :  { %v1929_v57 = vpop.eup %1928 }
 0x6b2   :  { %v1931_v25 = vpop.eup %1930  ;;  %v1561_v50 = vmul.f32 %v1929_v57, %v2804_v28 }
 0x6b3   :  { %v1933_v59 = vpop.eup %1932  ;;  %v1562_v11 = vmul.f32 %v1931_v25, %v2809_v7  ;;  %v1583_v7 = vld [vmem:[%s3368_s6] sm:$0xf]  ;;  %s2058_s6 = scalar_lea.vmem %s1763_s0, 256 }
 0x6b4   :  { %v1935_v26 = vpop.eup %1934  ;;  %v1563_v46 = vmul.f32 %v1933_v59, %v2802_v40  ;;  %v1880_v29 = vpack.c.bf16 %v1579_v5, %v1561_v50  ;;  %v1586_v40 = vpop.permute.xlu0 %1585  ;;  %p2059_p0 = scmp.ne.s32.totalorder %s1763_s0, %s2058_s6  ;;  %p2064_p2 = scmp.lt.s32.totalorder %s2058_s6, %s2058_s6 }
 0x6b5   :  { %v1564_v62 = vmul.f32 %v1935_v26, %v2806_v54  ;;  %v1877_v63 = vpack.c.bf16 %v1580_v58, %v1562_v11 }
 0x6b6   :  { %v1886_v28 = vpack.c.bf16 %v1581_v14, %v1563_v46  ;;  %p2065_p3 = por %p2064_p2, %p2063_p1 }
 0x6b7   :  { %1879 = vmatprep.subr.msk.bf16.mxu0 %vm1878_vm4, %v1877_v63  ;;  %v1883_v16 = vpack.c.bf16 %v1582_v61, %v1564_v62 }
 0x6b8   :  { %1882 = vmatpush1.bf16.msk.msra.mxu0 %vm1878_vm4, %v1880_v29  ;;  %p2066_p4 = pnand %p2065_p3, %p2059_p0 }
 0x6b9   :  { %1885 = vmatprep.subr.msk.bf16.mxu1 %vm1878_vm4, %v1883_v16 }
 0x6ba   :  { %1888 = vmatpush1.bf16.msk.msra.mxu1 %vm1878_vm4, %v1886_v28 }
 0x6bb   :  { %1793 = vmatmul.mubr.msk.f32.vlgmr.msra.gmra.mrb[8].mxu0 %vm1588_vm13, %v1583_v7 }
 0x6bd   :  { %1796 = vmatmul.mubr.msk.f32.vlgmr.msra.gmra.mrb[8].mxu1 %vm1588_vm13, %v1583_v7 }
 0x78e   :  { %v1670_v17 = vpop.f32.mrb[8].mxu0 }
 0x78f   :  { %v1671_v44 = vadd.f32 %v1670_v17, %v1586_v40  ;;  %v1672_v54 = vpop.f32.mrb[9].mxu0 }
 0x790   :  { %v1741_v9 = vpop.f32.mrb[8].mxu1  ;;  %v1673_v22 = vadd.f32 %v1672_v54, %v1586_v40 }
 0x791   :  { %v1743_v21 = vpop.f32.mrb[9].mxu1  ;;  %v1742_v6 = vadd.f32 %v1741_v9, %v1586_v40 }
 0x792   :  { %v1744_v33 = vadd.f32 %v1743_v21, %v1586_v40  ;;  %v1750_v60 = vcombine.low %v1671_v44, %v1673_v22 }
 0x794   :  { %1754 = vst [vmem:[#allocation3] sm:$0xff] %v1750_v60  ;;  %v1751_v8 = vcombine.low %v1742_v6, %v1744_v33 }
 0x796   :  { %1755 = vst [vmem:[#allocation3 + $0x8] sm:$0xff] %v1751_v8 }
 0x797   :  { %2069 = shalt.err (!%p2066_p4)
}
 0x798   :  { %s2070_s8 = scalar_lea.hbm %s3369_s7, 256 }
 0x799   :  { %p2071_p5 = scmp.ne.s32.totalorder %s3369_s7, %s2070_s8  ;;  %p2074_p6 = scmp.lt.u32.totalorder %s2070_s8, %s3369_s7 }
 0x79b   :  { %p2076_p7 = pnand %p2074_p6, %p2071_p5 }
 0x79d   :  { %2079 = shalt.err (!%p2076_p7)
}
 0x79e   :  { %1765 = dma.vmem_to_hbm [thread:$0]  %s1763_s0, 256, %s3369_s7, [#allocation4]  }
 0x79f   :  { %2080 = dma.done.wait [#allocation4], 256  }
 0x7a0   :  { %2081 = vsyncadd [#allocation4], 4294967040 }
 0x7a1   :  { %1769 = vsyncpa [#allocation4], 1 }

</bundles_post_ra>
